<compile_context>
chip_gen: v6e
topology: v6e:2x2x1
jax: 0.10.0
libtpu: 0.0.40
codegen_flags: <defaults>
</compile_context>

<pallas_src>
import math

import jax
import jax.numpy as jnp
from jax.experimental import pallas as pl

# ----------------------------- configuration -------------------------------
B = 2                      # batch
C = 3                      # image channels
IMG = 16                   # spatial size
PATCH = 8                  # patch size
N_PATCH = (IMG // PATCH) ** 2          # 4 patches
T = N_PATCH + 1                        # tokens = CLS + patches = 5
BT = B * T                             # fused (batch*token) slab rows = 10
D = 32                     # hidden size (scaled-down stand-in for 768)
N_HEADS = 4
HEAD_DIM = D // N_HEADS
MLP = 4 * D
N_LAYERS = 2
NUM_CLASSES = 16           # scaled-down stand-in for cfg num_classes
ARC_S = 32.0
ARC_M = 0.5
LN_EPS = 1e-12             # HF ViT layer_norm_eps

COS_M = math.cos(ARC_M)
SIN_M = math.sin(ARC_M)
TH = math.cos(math.pi - ARC_M)
MM = math.sin(math.pi - ARC_M) * ARC_M
NEG_INF = -1e9             # additive attention mask for cross-image pairs


# ------------------------------- kernel -------------------------------------
def _layernorm(x, gamma, beta):
    mu = jnp.mean(x, axis=-1, keepdims=True)
    var = jnp.mean((x - mu) ** 2, axis=-1, keepdims=True)
    return (x - mu) * jax.lax.rsqrt(var + LN_EPS) * gamma + beta


def _mm(a, b):
    # bf16 MXU operands, f32 accumulation.  Elementwise math stays f32.
    return jnp.dot(a.astype(jnp.bfloat16), b.astype(jnp.bfloat16),
                   preferred_element_type=jnp.float32)


def fused_vit_arcface_kernel(
    patches_ref,            # (BT, C*P*P) f32 ; CLS-slot rows are zero
    tok0_ref,               # (BT, D)     f32 ; cls_token / patch bias + pos embed
    bias_ref,               # (BT, BT)    f32 ; block-diagonal additive attn mask
    wp_ref,                 # (C*P*P, D)  bf16
    ln1g_ref, ln1b_ref,     # (L, 1, D)   f32
    wqkv_ref, bqkv_ref,     # (L, D, 3D)  bf16 / (L, 1, 3D) f32
    wpr_ref, bpr_ref,       # (L, D, D)   bf16 / (L, 1, D)  f32
    ln2g_ref, ln2b_ref,     # (L, 1, D)   f32
    w1_ref, b1_ref,         # (L, D, MLP) bf16 / (L, 1, MLP) f32
    w2_ref, b2_ref,         # (L, MLP, D) bf16 / (L, 1, D)  f32
    lnfg_ref, lnfb_ref,     # (1, D)      f32
    arcw_ref,               # (D, NUM_CLASSES) f32, pre-transposed (matmul-ready)
    lab_ref,                # (B, 1)      int32
    feat_ref,               # (B, D)            f32  out
    logit_ref,              # (B, NUM_CLASSES)  f32  out
):
    f32 = jnp.float32

    # ---- patch embedding + CLS token + positional embedding (one matmul) ----
    # patches_ref has a zero row at each CLS slot; tok0_ref already contains
    # cls_token + pos[0] on CLS rows and patch_bias + pos[1+j] on patch rows.
    x = _mm(patches_ref[...], wp_ref[...]) + tok0_ref[...]          # (BT, D) f32

    bias = bias_ref[...]                                            # (BT, BT)
    scale = 1.0 / math.sqrt(HEAD_DIM)

    for l in range(N_LAYERS):          # static unroll; weights stay VMEM-resident
        # ------------------- multi-head self-attention (pre-LN) --------------
        xn = _layernorm(x, ln1g_ref[l], ln1b_ref[l])
        qkv = _mm(xn, wqkv_ref[l]) + bqkv_ref[l]                    # (BT, 3D) f32
        ctx_heads = []
        for h in range(N_HEADS):                                    # static heads
            q = qkv[:, 0 * D + h * HEAD_DIM:0 * D + (h + 1) * HEAD_DIM]
            k = qkv[:, 1 * D + h * HEAD_DIM:1 * D + (h + 1) * HEAD_DIM]
            v = qkv[:, 2 * D + h * HEAD_DIM:2 * D + (h + 1) * HEAD_DIM]
            # QK^T over the whole (B*T) slab in one shot; the additive
            # block-diagonal mask zeroes cross-image attention.
            s = jnp.einsum("td,sd->ts", q, k,
                           preferred_element_type=f32) * scale + bias
            s = s - jnp.max(s, axis=-1, keepdims=True)
            p = jnp.exp(s)
            p = p * pl.reciprocal(jnp.sum(p, axis=-1, keepdims=True), approx=True)
            ctx_heads.append(jnp.dot(p, v, preferred_element_type=f32))
        ctx = jnp.concatenate(ctx_heads, axis=-1)                   # (BT, D), vregs
        x = x + _mm(ctx, wpr_ref[l]) + bpr_ref[l]

        # ----------------------------- MLP (pre-LN) --------------------------
        xn2 = _layernorm(x, ln2g_ref[l], ln2b_ref[l])
        h1 = _mm(xn2, w1_ref[l]) + b1_ref[l]
        # TODO(synk): HF ViT uses exact erf-GELU; tanh-approx GELU is used here.
        h1 = jax.nn.gelu(h1, approximate=True)
        x = x + _mm(h1, w2_ref[l]) + b2_ref[l]

    # ---------- CLS token -> final LayerNorm -> L2 normalize (F.normalize) ----
    # Gather the CLS rows (row b*T) with a tiny selection matmul: keeps the
    # gather MXU-side, no strided loads / relayouts.
    cols = jax.lax.broadcasted_iota(jnp.int32, (B, BT), 1)
    sel = (cols == jax.lax.broadcasted_iota(jnp.int32, (B, BT), 0) * T).astype(f32)
    cls = jnp.dot(sel, x, preferred_element_type=f32)               # (B, D)
    y = _layernorm(cls, lnfg_ref[...], lnfb_ref[...])
    nrm = jnp.sqrt(jnp.sum(y * y, axis=-1, keepdims=True))
    feat = y / jnp.maximum(nrm, 1e-12)                              # exact normalize
    feat_ref[...] = feat

    # ---------------------------- ArcMarginProduct ----------------------------
    w_t = arcw_ref[...]                                             # (D, NC)
    # per-class inverse norms via a ones-row matmul (lane-dense, MXU-side)
    colsq = jnp.dot(jnp.ones((1, D), f32), w_t * w_t,
                    preferred_element_type=f32)                     # (1, NC)
    inv_wn = jax.lax.rsqrt(jnp.maximum(colsq, 1e-24))
    cos = jnp.dot(feat, w_t, preferred_element_type=f32) * inv_wn   # cos theta
    cos = jnp.clip(cos, -1.0, 1.0)
    sin = jnp.sqrt(jnp.maximum(1.0 - cos * cos, 0.0))
    cos_m = cos * COS_M - sin * SIN_M
    cos_m = jnp.where(cos > TH, cos_m, cos - MM)
    onehot = (jax.lax.broadcasted_iota(jnp.int32, cos.shape, 1)
              == lab_ref[...]).astype(f32)
    logit_ref[...] = (onehot * cos_m + (1.0 - onehot) * cos) * ARC_S


# ------------------------------ wrappers -------------------------------------
def extract_patches(x):
    # x: NCHW -> (B, N_PATCH, C*P*P); matches Conv2d(kernel=stride=PATCH) rows.
    b, c, h, w = x.shape
    xp = x.reshape(b, c, h // PATCH, PATCH, w // PATCH, PATCH)
    xp = xp.transpose(0, 2, 4, 1, 3, 5)                 # B, H/P, W/P, C, P, P
    return xp.reshape(b, N_PATCH, c * PATCH * PATCH)


def build_glue_inputs(x, p):
    """Layout / parameter-only glue (no data-dependent compute)."""
    cpp = C * PATCH * PATCH
    patches = extract_patches(x)                                    # (B, N, CPP)
    # Insert a zero row per image at the CLS slot so one matmul in the kernel
    # produces the full token slab.
    patches_aug = jnp.concatenate(
        [jnp.zeros((B, 1, cpp), jnp.float32), patches], axis=1
    ).reshape(BT, cpp)
    # Token-init slab: CLS rows carry cls_token + pos[0]; patch rows carry the
    # patch-embedding bias + pos[1+j].
    tok0 = jnp.concatenate(
        [p["cls_token"],
         jnp.broadcast_to(p["b_patch"][None], (1, N_PATCH, D))], axis=1
    ) + p["pos_embed"]                                              # (1, T, D)
    tok0 = jnp.broadcast_to(tok0, (B, T, D)).reshape(BT, D)
    # Block-diagonal additive attention mask (same-image pairs -> 0, else -1e9).
    bid = jnp.arange(BT, dtype=jnp.int32) // T
    attn_bias = jnp.where(bid[:, None] == bid[None, :], 0.0, NEG_INF
                          ).astype(jnp.float32)
    return patches_aug, tok0, attn_bias


def vit_arcface_forward(x, labels, p):
    patches_aug, tok0, attn_bias = build_glue_inputs(x, p)
    feat, logits = pl.pallas_call(
        fused_vit_arcface_kernel,
        out_shape=(jax.ShapeDtypeStruct((B, D), jnp.float32),
                   jax.ShapeDtypeStruct((B, NUM_CLASSES), jnp.float32)),
    )(patches_aug, tok0, attn_bias, p["w_patch"],
      p["ln1_g"], p["ln1_b"], p["wqkv"], p["bqkv"], p["wproj"], p["bproj"],
      p["ln2_g"], p["ln2_b"], p["w1"], p["b1"], p["w2"], p["b2"],
      p["ln_f_g"], p["ln_f_b"], p["arc_wt"],
      labels.reshape(B, 1).astype(jnp.int32))
    return feat, logits


def init_params(key):
    ks = iter(jax.random.split(key, 4 + N_LAYERS * 6))
    nrm = lambda k, shape, s: jax.random.normal(k, shape, jnp.float32) * s
    p = {}
    p["w_patch"] = nrm(next(ks), (C * PATCH * PATCH, D), 0.02).astype(jnp.bfloat16)
    p["b_patch"] = jnp.zeros((1, D), jnp.float32)
    p["cls_token"] = nrm(next(ks), (1, 1, D), 0.02)
    p["pos_embed"] = nrm(next(ks), (1, T, D), 0.02)

    acc = {k: [] for k in ("ln1_g", "ln1_b", "wqkv", "bqkv", "wproj", "bproj",
                           "ln2_g", "ln2_b", "w1", "b1", "w2", "b2")}
    for _ in range(N_LAYERS):
        acc["ln1_g"].append(jnp.ones((1, D), jnp.float32))
        acc["ln1_b"].append(jnp.zeros((1, D), jnp.float32))
        acc["wqkv"].append(nrm(next(ks), (D, 3 * D), 0.02))
        acc["bqkv"].append(jnp.zeros((1, 3 * D), jnp.float32))
        acc["wproj"].append(nrm(next(ks), (D, D), 0.02))
        acc["bproj"].append(jnp.zeros((1, D), jnp.float32))
        acc["ln2_g"].append(jnp.ones((1, D), jnp.float32))
        acc["ln2_b"].append(jnp.zeros((1, D), jnp.float32))
        acc["w1"].append(nrm(next(ks), (D, MLP), 0.02))
        acc["b1"].append(jnp.zeros((1, MLP), jnp.float32))
        acc["w2"].append(nrm(next(ks), (MLP, D), 0.02))
        acc["b2"].append(jnp.zeros((1, D), jnp.float32))
    for name, lst in acc.items():
        arr = jnp.stack(lst, axis=0)                    # leading layer axis
        if name in ("wqkv", "wproj", "w1", "w2"):
            arr = arr.astype(jnp.bfloat16)              # bf16 MXU operands
        p[name] = arr

    p["ln_f_g"] = jnp.ones((1, D), jnp.float32)
    p["ln_f_b"] = jnp.zeros((1, D), jnp.float32)
    # xavier-uniform stand-in for ArcMargin weight (out_feature, in_feature),
    # stored pre-transposed (in_feature, out_feature) so the kernel matmul is
    # lane-dense with no in-kernel transpose.
    limit = math.sqrt(6.0 / (NUM_CLASSES + D))
    arc_w = jax.random.uniform(next(ks), (NUM_CLASSES, D), jnp.float32,
                               -limit, limit)
    p["arc_wt"] = arc_w.T
    return p


# -------------------------------- main ---------------------------------------
if __name__ == "__main__":
    key = jax.random.PRNGKey(0)
    k_x, k_lab, k_p = jax.random.split(key, 3)
    x = jax.random.normal(k_x, (B, C, IMG, IMG), jnp.float32)
    labels = jax.random.randint(k_lab, (B,), 0, NUM_CLASSES).astype(jnp.int32)
    params = init_params(k_p)

    fwd = jax.jit(vit_arcface_forward)
    feat, logits = fwd(x, labels, params)
    feat = jax.block_until_ready(feat)
    logits = jax.block_until_ready(logits)

    assert feat.shape == (B, D) and logits.shape == (B, NUM_CLASSES)
    assert bool(jnp.all(jnp.isfinite(feat))) and bool(jnp.all(jnp.isfinite(logits)))
    # feature rows should be unit-norm (F.normalize)
    assert bool(jnp.all(jnp.abs(jnp.sum(feat * feat, axis=-1) - 1.0) < 1e-4))
    print("KERNEL_OK")
</pallas_src>

<mosaic_0001>
module attributes {stable_mosaic.version = 11 : i64} {
  func.func @fused_vit_arcface_kernel(%arg0: memref<10x192xf32, #tpu.memory_space<vmem>>, %arg1: memref<10x32xf32, #tpu.memory_space<vmem>>, %arg2: memref<10x10xf32, #tpu.memory_space<vmem>>, %arg3: memref<192x32xbf16, #tpu.memory_space<vmem>>, %arg4: memref<2x1x32xf32, #tpu.memory_space<vmem>>, %arg5: memref<2x1x32xf32, #tpu.memory_space<vmem>>, %arg6: memref<2x32x96xbf16, #tpu.memory_space<vmem>>, %arg7: memref<2x1x96xf32, #tpu.memory_space<vmem>>, %arg8: memref<2x32x32xbf16, #tpu.memory_space<vmem>>, %arg9: memref<2x1x32xf32, #tpu.memory_space<vmem>>, %arg10: memref<2x1x32xf32, #tpu.memory_space<vmem>>, %arg11: memref<2x1x32xf32, #tpu.memory_space<vmem>>, %arg12: memref<2x32x128xbf16, #tpu.memory_space<vmem>>, %arg13: memref<2x1x128xf32, #tpu.memory_space<vmem>>, %arg14: memref<2x128x32xbf16, #tpu.memory_space<vmem>>, %arg15: memref<2x1x32xf32, #tpu.memory_space<vmem>>, %arg16: memref<1x32xf32, #tpu.memory_space<vmem>>, %arg17: memref<1x32xf32, #tpu.memory_space<vmem>>, %arg18: memref<32x16xf32, #tpu.memory_space<vmem>>, %arg19: memref<2x1xi32, #tpu.memory_space<vmem>>, %arg20: memref<2x32xf32, #tpu.memory_space<vmem>>, %arg21: memref<2x16xf32, #tpu.memory_space<vmem>>) attributes {dimension_semantics = [], scalar_prefetch = 0 : i64, scratch_operands = 0 : i64, tpu.core_type = #tpu.core_type<tc>} {
    %c0 = arith.constant 0 : index
    %c0_0 = arith.constant 0 : index
    %0 = vector.load %arg0[%c0, %c0_0] : memref<10x192xf32, #tpu.memory_space<vmem>>, vector<10x192xf32>
    %c0_1 = arith.constant 0 : index
    %c0_2 = arith.constant 0 : index
    %1 = vector.load %arg3[%c0_1, %c0_2] : memref<192x32xbf16, #tpu.memory_space<vmem>>, vector<192x32xbf16>
    %2 = arith.truncf %0 : vector<10x192xf32> to vector<10x192xbf16>
    %cst = arith.constant dense<0.000000e+00> : vector<10x32xf32>
    %3 = tpu.matmul %2, %1, %cst {dimension_numbers = #tpu.dot_dimension_numbers<[1], [0], [0], [1], [0, 0, 1, 1], [], []>} : vector<10x192xbf16>, vector<192x32xbf16>, vector<10x32xf32> -> vector<10x32xf32>
    %c0_3 = arith.constant 0 : index
    %c0_4 = arith.constant 0 : index
    %4 = vector.load %arg1[%c0_3, %c0_4] : memref<10x32xf32, #tpu.memory_space<vmem>>, vector<10x32xf32>
    %5 = arith.addf %3, %4 : vector<10x32xf32>
    %c0_5 = arith.constant 0 : index
    %c0_6 = arith.constant 0 : index
    %6 = vector.load %arg2[%c0_5, %c0_6] : memref<10x10xf32, #tpu.memory_space<vmem>>, vector<10x10xf32>
    %c0_7 = arith.constant 0 : index
    %c0_8 = arith.constant 0 : index
    %c0_9 = arith.constant 0 : index
    %7 = vector.load %arg4[%c0_7, %c0_8, %c0_9] : memref<2x1x32xf32, #tpu.memory_space<vmem>>, vector<1x1x32xf32>
    %8 = vector.shape_cast %7 : vector<1x1x32xf32> to vector<1x32xf32>
    %c0_10 = arith.constant 0 : index
    %c0_11 = arith.constant 0 : index
    %c0_12 = arith.constant 0 : index
    %9 = vector.load %arg5[%c0_10, %c0_11, %c0_12] : memref<2x1x32xf32, #tpu.memory_space<vmem>>, vector<1x1x32xf32>
    %10 = vector.shape_cast %9 : vector<1x1x32xf32> to vector<1x32xf32>
    %cst_13 = arith.constant dense<0.000000e+00> : vector<10xf32>
    %11 = vector.multi_reduction <add>, %5, %cst_13 [1] : vector<10x32xf32> to vector<10xf32>
    %12 = vector.shape_cast %11 : vector<10xf32> to vector<10x1xf32>
    %cst_14 = arith.constant 3.200000e+01 : f32
    %13 = vector.broadcast %cst_14 : f32 to vector<10x1xf32>
    %14 = arith.divf %12, %13 : vector<10x1xf32>
    %15 = vector.broadcast %14 : vector<10x1xf32> to vector<10x32xf32>
    %16 = arith.subf %5, %15 : vector<10x32xf32>
    %17 = arith.mulf %16, %16 : vector<10x32xf32>
    %cst_15 = arith.constant dense<0.000000e+00> : vector<10xf32>
    %18 = vector.multi_reduction <add>, %17, %cst_15 [1] : vector<10x32xf32> to vector<10xf32>
    %19 = vector.shape_cast %18 : vector<10xf32> to vector<10x1xf32>
    %cst_16 = arith.constant 3.200000e+01 : f32
    %20 = vector.broadcast %cst_16 : f32 to vector<10x1xf32>
    %21 = arith.divf %19, %20 : vector<10x1xf32>
    %22 = vector.broadcast %14 : vector<10x1xf32> to vector<10x32xf32>
    %23 = arith.subf %5, %22 : vector<10x32xf32>
    %cst_17 = arith.constant 9.99999996E-13 : f32
    %24 = vector.broadcast %cst_17 : f32 to vector<10x1xf32>
    %25 = arith.addf %21, %24 : vector<10x1xf32>
    %26 = math.rsqrt %25 : vector<10x1xf32>
    %27 = vector.broadcast %26 : vector<10x1xf32> to vector<10x32xf32>
    %28 = arith.mulf %23, %27 : vector<10x32xf32>
    %29 = vector.broadcast %8 : vector<1x32xf32> to vector<10x32xf32>
    %30 = arith.mulf %28, %29 : vector<10x32xf32>
    %31 = vector.broadcast %10 : vector<1x32xf32> to vector<10x32xf32>
    %32 = arith.addf %30, %31 : vector<10x32xf32>
    %c0_18 = arith.constant 0 : index
    %c0_19 = arith.constant 0 : index
    %c0_20 = arith.constant 0 : index
    %33 = vector.load %arg6[%c0_18, %c0_19, %c0_20] : memref<2x32x96xbf16, #tpu.memory_space<vmem>>, vector<1x32x96xbf16>
    %34 = vector.shape_cast %33 : vector<1x32x96xbf16> to vector<32x96xbf16>
    %35 = arith.truncf %32 : vector<10x32xf32> to vector<10x32xbf16>
    %cst_21 = arith.constant dense<0.000000e+00> : vector<10x96xf32>
    %36 = tpu.matmul %35, %34, %cst_21 {dimension_numbers = #tpu.dot_dimension_numbers<[1], [0], [0], [1], [0, 0, 1, 1], [], []>} : vector<10x32xbf16>, vector<32x96xbf16>, vector<10x96xf32> -> vector<10x96xf32>
    %c0_22 = arith.constant 0 : index
    %c0_23 = arith.constant 0 : index
    %c0_24 = arith.constant 0 : index
    %37 = vector.load %arg7[%c0_22, %c0_23, %c0_24] : memref<2x1x96xf32, #tpu.memory_space<vmem>>, vector<1x1x96xf32>
    %38 = vector.shape_cast %37 : vector<1x1x96xf32> to vector<1x96xf32>
    %39 = vector.broadcast %38 : vector<1x96xf32> to vector<10x96xf32>
    %40 = arith.addf %36, %39 : vector<10x96xf32>
    %41 = vector.extract_strided_slice %40 {offsets = [0, 0], sizes = [10, 8], strides = [1, 1]} : vector<10x96xf32> to vector<10x8xf32>
    %42 = vector.extract_strided_slice %40 {offsets = [0, 32], sizes = [10, 8], strides = [1, 1]} : vector<10x96xf32> to vector<10x8xf32>
    %43 = vector.extract_strided_slice %40 {offsets = [0, 64], sizes = [10, 8], strides = [1, 1]} : vector<10x96xf32> to vector<10x8xf32>
    "tpu.trace_start"() <{level = 10 : i32, message = "td,sd->ts"}> : () -> ()
    %cst_25 = arith.constant dense<0.000000e+00> : vector<10x10xf32>
    %44 = tpu.matmul %41, %42, %cst_25 {dimension_numbers = #tpu.dot_dimension_numbers<[1], [1], [0], [0], [0, 0, 1, 0], [], []>} : vector<10x8xf32>, vector<10x8xf32>, vector<10x10xf32> -> vector<10x10xf32>
    "tpu.trace_stop"() : () -> ()
    %cst_26 = arith.constant 0.353553385 : f32
    %45 = vector.broadcast %cst_26 : f32 to vector<10x10xf32>
    %46 = arith.mulf %44, %45 : vector<10x10xf32>
    %47 = arith.addf %46, %6 : vector<10x10xf32>
    %cst_27 = arith.constant dense<0xFF800000> : vector<10xf32>
    %48 = vector.multi_reduction <maximumf>, %47, %cst_27 [1] : vector<10x10xf32> to vector<10xf32>
    %49 = vector.shape_cast %48 : vector<10xf32> to vector<10x1xf32>
    %50 = vector.broadcast %49 : vector<10x1xf32> to vector<10x10xf32>
    %51 = arith.subf %47, %50 : vector<10x10xf32>
    %52 = math.exp %51 : vector<10x10xf32>
    %cst_28 = arith.constant dense<0.000000e+00> : vector<10xf32>
    %53 = vector.multi_reduction <add>, %52, %cst_28 [1] : vector<10x10xf32> to vector<10xf32>
    %54 = vector.shape_cast %53 : vector<10xf32> to vector<10x1xf32>
    %55 = tpu.reciprocal %54 {approx = true} : vector<10x1xf32> -> vector<10x1xf32>
    %56 = vector.broadcast %55 : vector<10x1xf32> to vector<10x10xf32>
    %57 = arith.mulf %52, %56 : vector<10x10xf32>
    %cst_29 = arith.constant dense<0.000000e+00> : vector<10x8xf32>
    %58 = tpu.matmul %57, %43, %cst_29 {dimension_numbers = #tpu.dot_dimension_numbers<[1], [0], [0], [1], [0, 0, 1, 1], [], []>} : vector<10x10xf32>, vector<10x8xf32>, vector<10x8xf32> -> vector<10x8xf32>
    %59 = vector.extract_strided_slice %40 {offsets = [0, 8], sizes = [10, 8], strides = [1, 1]} : vector<10x96xf32> to vector<10x8xf32>
    %60 = vector.extract_strided_slice %40 {offsets = [0, 40], sizes = [10, 8], strides = [1, 1]} : vector<10x96xf32> to vector<10x8xf32>
    %61 = vector.extract_strided_slice %40 {offsets = [0, 72], sizes = [10, 8], strides = [1, 1]} : vector<10x96xf32> to vector<10x8xf32>
    "tpu.trace_start"() <{level = 10 : i32, message = "td,sd->ts"}> : () -> ()
    %cst_30 = arith.constant dense<0.000000e+00> : vector<10x10xf32>
    %62 = tpu.matmul %59, %60, %cst_30 {dimension_numbers = #tpu.dot_dimension_numbers<[1], [1], [0], [0], [0, 0, 1, 0], [], []>} : vector<10x8xf32>, vector<10x8xf32>, vector<10x10xf32> -> vector<10x10xf32>
    "tpu.trace_stop"() : () -> ()
    %cst_31 = arith.constant 0.353553385 : f32
    %63 = vector.broadcast %cst_31 : f32 to vector<10x10xf32>
    %64 = arith.mulf %62, %63 : vector<10x10xf32>
    %65 = arith.addf %64, %6 : vector<10x10xf32>
    %cst_32 = arith.constant dense<0xFF800000> : vector<10xf32>
    %66 = vector.multi_reduction <maximumf>, %65, %cst_32 [1] : vector<10x10xf32> to vector<10xf32>
    %67 = vector.shape_cast %66 : vector<10xf32> to vector<10x1xf32>
    %68 = vector.broadcast %67 : vector<10x1xf32> to vector<10x10xf32>
    %69 = arith.subf %65, %68 : vector<10x10xf32>
    %70 = math.exp %69 : vector<10x10xf32>
    %cst_33 = arith.constant dense<0.000000e+00> : vector<10xf32>
    %71 = vector.multi_reduction <add>, %70, %cst_33 [1] : vector<10x10xf32> to vector<10xf32>
    %72 = vector.shape_cast %71 : vector<10xf32> to vector<10x1xf32>
    %73 = tpu.reciprocal %72 {approx = true} : vector<10x1xf32> -> vector<10x1xf32>
    %74 = vector.broadcast %73 : vector<10x1xf32> to vector<10x10xf32>
    %75 = arith.mulf %70, %74 : vector<10x10xf32>
    %cst_34 = arith.constant dense<0.000000e+00> : vector<10x8xf32>
    %76 = tpu.matmul %75, %61, %cst_34 {dimension_numbers = #tpu.dot_dimension_numbers<[1], [0], [0], [1], [0, 0, 1, 1], [], []>} : vector<10x10xf32>, vector<10x8xf32>, vector<10x8xf32> -> vector<10x8xf32>
    %77 = vector.extract_strided_slice %40 {offsets = [0, 16], sizes = [10, 8], strides = [1, 1]} : vector<10x96xf32> to vector<10x8xf32>
    %78 = vector.extract_strided_slice %40 {offsets = [0, 48], sizes = [10, 8], strides = [1, 1]} : vector<10x96xf32> to vector<10x8xf32>
    %79 = vector.extract_strided_slice %40 {offsets = [0, 80], sizes = [10, 8], strides = [1, 1]} : vector<10x96xf32> to vector<10x8xf32>
    "tpu.trace_start"() <{level = 10 : i32, message = "td,sd->ts"}> : () -> ()
    %cst_35 = arith.constant dense<0.000000e+00> : vector<10x10xf32>
    %80 = tpu.matmul %77, %78, %cst_35 {dimension_numbers = #tpu.dot_dimension_numbers<[1], [1], [0], [0], [0, 0, 1, 0], [], []>} : vector<10x8xf32>, vector<10x8xf32>, vector<10x10xf32> -> vector<10x10xf32>
    "tpu.trace_stop"() : () -> ()
    %cst_36 = arith.constant 0.353553385 : f32
    %81 = vector.broadcast %cst_36 : f32 to vector<10x10xf32>
    %82 = arith.mulf %80, %81 : vector<10x10xf32>
    %83 = arith.addf %82, %6 : vector<10x10xf32>
    %cst_37 = arith.constant dense<0xFF800000> : vector<10xf32>
    %84 = vector.multi_reduction <maximumf>, %83, %cst_37 [1] : vector<10x10xf32> to vector<10xf32>
    %85 = vector.shape_cast %84 : vector<10xf32> to vector<10x1xf32>
    %86 = vector.broadcast %85 : vector<10x1xf32> to vector<10x10xf32>
    %87 = arith.subf %83, %86 : vector<10x10xf32>
    %88 = math.exp %87 : vector<10x10xf32>
    %cst_38 = arith.constant dense<0.000000e+00> : vector<10xf32>
    %89 = vector.multi_reduction <add>, %88, %cst_38 [1] : vector<10x10xf32> to vector<10xf32>
    %90 = vector.shape_cast %89 : vector<10xf32> to vector<10x1xf32>
    %91 = tpu.reciprocal %90 {approx = true} : vector<10x1xf32> -> vector<10x1xf32>
    %92 = vector.broadcast %91 : vector<10x1xf32> to vector<10x10xf32>
    %93 = arith.mulf %88, %92 : vector<10x10xf32>
    %cst_39 = arith.constant dense<0.000000e+00> : vector<10x8xf32>
    %94 = tpu.matmul %93, %79, %cst_39 {dimension_numbers = #tpu.dot_dimension_numbers<[1], [0], [0], [1], [0, 0, 1, 1], [], []>} : vector<10x10xf32>, vector<10x8xf32>, vector<10x8xf32> -> vector<10x8xf32>
    %95 = vector.extract_strided_slice %40 {offsets = [0, 24], sizes = [10, 8], strides = [1, 1]} : vector<10x96xf32> to vector<10x8xf32>
    %96 = vector.extract_strided_slice %40 {offsets = [0, 56], sizes = [10, 8], strides = [1, 1]} : vector<10x96xf32> to vector<10x8xf32>
    %97 = vector.extract_strided_slice %40 {offsets = [0, 88], sizes = [10, 8], strides = [1, 1]} : vector<10x96xf32> to vector<10x8xf32>
    "tpu.trace_start"() <{level = 10 : i32, message = "td,sd->ts"}> : () -> ()
    %cst_40 = arith.constant dense<0.000000e+00> : vector<10x10xf32>
    %98 = tpu.matmul %95, %96, %cst_40 {dimension_numbers = #tpu.dot_dimension_numbers<[1], [1], [0], [0], [0, 0, 1, 0], [], []>} : vector<10x8xf32>, vector<10x8xf32>, vector<10x10xf32> -> vector<10x10xf32>
    "tpu.trace_stop"() : () -> ()
    %cst_41 = arith.constant 0.353553385 : f32
    %99 = vector.broadcast %cst_41 : f32 to vector<10x10xf32>
    %100 = arith.mulf %98, %99 : vector<10x10xf32>
    %101 = arith.addf %100, %6 : vector<10x10xf32>
    %cst_42 = arith.constant dense<0xFF800000> : vector<10xf32>
    %102 = vector.multi_reduction <maximumf>, %101, %cst_42 [1] : vector<10x10xf32> to vector<10xf32>
    %103 = vector.shape_cast %102 : vector<10xf32> to vector<10x1xf32>
    %104 = vector.broadcast %103 : vector<10x1xf32> to vector<10x10xf32>
    %105 = arith.subf %101, %104 : vector<10x10xf32>
    %106 = math.exp %105 : vector<10x10xf32>
    %cst_43 = arith.constant dense<0.000000e+00> : vector<10xf32>
    %107 = vector.multi_reduction <add>, %106, %cst_43 [1] : vector<10x10xf32> to vector<10xf32>
    %108 = vector.shape_cast %107 : vector<10xf32> to vector<10x1xf32>
    %109 = tpu.reciprocal %108 {approx = true} : vector<10x1xf32> -> vector<10x1xf32>
    %110 = vector.broadcast %109 : vector<10x1xf32> to vector<10x10xf32>
    %111 = arith.mulf %106, %110 : vector<10x10xf32>
    %cst_44 = arith.constant dense<0.000000e+00> : vector<10x8xf32>
    %112 = tpu.matmul %111, %97, %cst_44 {dimension_numbers = #tpu.dot_dimension_numbers<[1], [0], [0], [1], [0, 0, 1, 1], [], []>} : vector<10x10xf32>, vector<10x8xf32>, vector<10x8xf32> -> vector<10x8xf32>
    %113 = tpu.concatenate %58, %76, %94, %112 in 1 : vector<10x8xf32>, vector<10x8xf32>, vector<10x8xf32>, vector<10x8xf32> -> vector<10x32xf32>
    %c0_45 = arith.constant 0 : index
    %c0_46 = arith.constant 0 : index
    %c0_47 = arith.constant 0 : index
    %114 = vector.load %arg8[%c0_45, %c0_46, %c0_47] : memref<2x32x32xbf16, #tpu.memory_space<vmem>>, vector<1x32x32xbf16>
    %115 = vector.shape_cast %114 : vector<1x32x32xbf16> to vector<32x32xbf16>
    %116 = arith.truncf %113 : vector<10x32xf32> to vector<10x32xbf16>
    %cst_48 = arith.constant dense<0.000000e+00> : vector<10x32xf32>
    %117 = tpu.matmul %116, %115, %cst_48 {dimension_numbers = #tpu.dot_dimension_numbers<[1], [0], [0], [1], [0, 0, 1, 1], [], []>} : vector<10x32xbf16>, vector<32x32xbf16>, vector<10x32xf32> -> vector<10x32xf32>
    %118 = arith.addf %5, %117 : vector<10x32xf32>
    %c0_49 = arith.constant 0 : index
    %c0_50 = arith.constant 0 : index
    %c0_51 = arith.constant 0 : index
    %119 = vector.load %arg9[%c0_49, %c0_50, %c0_51] : memref<2x1x32xf32, #tpu.memory_space<vmem>>, vector<1x1x32xf32>
    %120 = vector.shape_cast %119 : vector<1x1x32xf32> to vector<1x32xf32>
    %121 = vector.broadcast %120 : vector<1x32xf32> to vector<10x32xf32>
    %122 = arith.addf %118, %121 : vector<10x32xf32>
    %c0_52 = arith.constant 0 : index
    %c0_53 = arith.constant 0 : index
    %c0_54 = arith.constant 0 : index
    %123 = vector.load %arg10[%c0_52, %c0_53, %c0_54] : memref<2x1x32xf32, #tpu.memory_space<vmem>>, vector<1x1x32xf32>
    %124 = vector.shape_cast %123 : vector<1x1x32xf32> to vector<1x32xf32>
    %c0_55 = arith.constant 0 : index
    %c0_56 = arith.constant 0 : index
    %c0_57 = arith.constant 0 : index
    %125 = vector.load %arg11[%c0_55, %c0_56, %c0_57] : memref<2x1x32xf32, #tpu.memory_space<vmem>>, vector<1x1x32xf32>
    %126 = vector.shape_cast %125 : vector<1x1x32xf32> to vector<1x32xf32>
    %cst_58 = arith.constant dense<0.000000e+00> : vector<10xf32>
    %127 = vector.multi_reduction <add>, %122, %cst_58 [1] : vector<10x32xf32> to vector<10xf32>
    %128 = vector.shape_cast %127 : vector<10xf32> to vector<10x1xf32>
    %cst_59 = arith.constant 3.200000e+01 : f32
    %129 = vector.broadcast %cst_59 : f32 to vector<10x1xf32>
    %130 = arith.divf %128, %129 : vector<10x1xf32>
    %131 = vector.broadcast %130 : vector<10x1xf32> to vector<10x32xf32>
    %132 = arith.subf %122, %131 : vector<10x32xf32>
    %133 = arith.mulf %132, %132 : vector<10x32xf32>
    %cst_60 = arith.constant dense<0.000000e+00> : vector<10xf32>
    %134 = vector.multi_reduction <add>, %133, %cst_60 [1] : vector<10x32xf32> to vector<10xf32>
    %135 = vector.shape_cast %134 : vector<10xf32> to vector<10x1xf32>
    %cst_61 = arith.constant 3.200000e+01 : f32
    %136 = vector.broadcast %cst_61 : f32 to vector<10x1xf32>
    %137 = arith.divf %135, %136 : vector<10x1xf32>
    %138 = vector.broadcast %130 : vector<10x1xf32> to vector<10x32xf32>
    %139 = arith.subf %122, %138 : vector<10x32xf32>
    %cst_62 = arith.constant 9.99999996E-13 : f32
    %140 = vector.broadcast %cst_62 : f32 to vector<10x1xf32>
    %141 = arith.addf %137, %140 : vector<10x1xf32>
    %142 = math.rsqrt %141 : vector<10x1xf32>
    %143 = vector.broadcast %142 : vector<10x1xf32> to vector<10x32xf32>
    %144 = arith.mulf %139, %143 : vector<10x32xf32>
    %145 = vector.broadcast %124 : vector<1x32xf32> to vector<10x32xf32>
    %146 = arith.mulf %144, %145 : vector<10x32xf32>
    %147 = vector.broadcast %126 : vector<1x32xf32> to vector<10x32xf32>
    %148 = arith.addf %146, %147 : vector<10x32xf32>
    %c0_63 = arith.constant 0 : index
    %c0_64 = arith.constant 0 : index
    %c0_65 = arith.constant 0 : index
    %149 = vector.load %arg12[%c0_63, %c0_64, %c0_65] : memref<2x32x128xbf16, #tpu.memory_space<vmem>>, vector<1x32x128xbf16>
    %150 = vector.shape_cast %149 : vector<1x32x128xbf16> to vector<32x128xbf16>
    %151 = arith.truncf %148 : vector<10x32xf32> to vector<10x32xbf16>
    %cst_66 = arith.constant dense<0.000000e+00> : vector<10x128xf32>
    %152 = tpu.matmul %151, %150, %cst_66 {dimension_numbers = #tpu.dot_dimension_numbers<[1], [0], [0], [1], [0, 0, 1, 1], [], []>} : vector<10x32xbf16>, vector<32x128xbf16>, vector<10x128xf32> -> vector<10x128xf32>
    %c0_67 = arith.constant 0 : index
    %c0_68 = arith.constant 0 : index
    %c0_69 = arith.constant 0 : index
    %153 = vector.load %arg13[%c0_67, %c0_68, %c0_69] : memref<2x1x128xf32, #tpu.memory_space<vmem>>, vector<1x1x128xf32>
    %154 = vector.shape_cast %153 : vector<1x1x128xf32> to vector<1x128xf32>
    %155 = vector.broadcast %154 : vector<1x128xf32> to vector<10x128xf32>
    %156 = arith.addf %152, %155 : vector<10x128xf32>
    %157 = arith.mulf %156, %156 : vector<10x128xf32>
    %158 = arith.mulf %156, %157 : vector<10x128xf32>
    %cst_70 = arith.constant 4.471500e-02 : f32
    %159 = vector.broadcast %cst_70 : f32 to vector<10x128xf32>
    %160 = arith.mulf %159, %158 : vector<10x128xf32>
    %161 = arith.addf %156, %160 : vector<10x128xf32>
    %cst_71 = arith.constant 0.797884583 : f32
    %162 = vector.broadcast %cst_71 : f32 to vector<10x128xf32>
    %163 = arith.mulf %162, %161 : vector<10x128xf32>
    %164 = math.tanh %163 : vector<10x128xf32>
    %cst_72 = arith.constant 1.000000e+00 : f32
    %165 = vector.broadcast %cst_72 : f32 to vector<10x128xf32>
    %166 = arith.addf %165, %164 : vector<10x128xf32>
    %cst_73 = arith.constant 5.000000e-01 : f32
    %167 = vector.broadcast %cst_73 : f32 to vector<10x128xf32>
    %168 = arith.mulf %167, %166 : vector<10x128xf32>
    %169 = arith.mulf %156, %168 : vector<10x128xf32>
    %c0_74 = arith.constant 0 : index
    %c0_75 = arith.constant 0 : index
    %c0_76 = arith.constant 0 : index
    %170 = vector.load %arg14[%c0_74, %c0_75, %c0_76] : memref<2x128x32xbf16, #tpu.memory_space<vmem>>, vector<1x128x32xbf16>
    %171 = vector.shape_cast %170 : vector<1x128x32xbf16> to vector<128x32xbf16>
    %172 = arith.truncf %169 : vector<10x128xf32> to vector<10x128xbf16>
    %cst_77 = arith.constant dense<0.000000e+00> : vector<10x32xf32>
    %173 = tpu.matmul %172, %171, %cst_77 {dimension_numbers = #tpu.dot_dimension_numbers<[1], [0], [0], [1], [0, 0, 1, 1], [], []>} : vector<10x128xbf16>, vector<128x32xbf16>, vector<10x32xf32> -> vector<10x32xf32>
    %174 = arith.addf %122, %173 : vector<10x32xf32>
    %c0_78 = arith.constant 0 : index
    %c0_79 = arith.constant 0 : index
    %c0_80 = arith.constant 0 : index
    %175 = vector.load %arg15[%c0_78, %c0_79, %c0_80] : memref<2x1x32xf32, #tpu.memory_space<vmem>>, vector<1x1x32xf32>
    %176 = vector.shape_cast %175 : vector<1x1x32xf32> to vector<1x32xf32>
    %177 = vector.broadcast %176 : vector<1x32xf32> to vector<10x32xf32>
    %178 = arith.addf %174, %177 : vector<10x32xf32>
    %c1 = arith.constant 1 : index
    %c0_81 = arith.constant 0 : index
    %c0_82 = arith.constant 0 : index
    %179 = vector.load %arg4[%c1, %c0_81, %c0_82] : memref<2x1x32xf32, #tpu.memory_space<vmem>>, vector<1x1x32xf32>
    %180 = vector.shape_cast %179 : vector<1x1x32xf32> to vector<1x32xf32>
    %c1_83 = arith.constant 1 : index
    %c0_84 = arith.constant 0 : index
    %c0_85 = arith.constant 0 : index
    %181 = vector.load %arg5[%c1_83, %c0_84, %c0_85] : memref<2x1x32xf32, #tpu.memory_space<vmem>>, vector<1x1x32xf32>
    %182 = vector.shape_cast %181 : vector<1x1x32xf32> to vector<1x32xf32>
    %cst_86 = arith.constant dense<0.000000e+00> : vector<10xf32>
    %183 = vector.multi_reduction <add>, %178, %cst_86 [1] : vector<10x32xf32> to vector<10xf32>
    %184 = vector.shape_cast %183 : vector<10xf32> to vector<10x1xf32>
    %cst_87 = arith.constant 3.200000e+01 : f32
    %185 = vector.broadcast %cst_87 : f32 to vector<10x1xf32>
    %186 = arith.divf %184, %185 : vector<10x1xf32>
    %187 = vector.broadcast %186 : vector<10x1xf32> to vector<10x32xf32>
    %188 = arith.subf %178, %187 : vector<10x32xf32>
    %189 = arith.mulf %188, %188 : vector<10x32xf32>
    %cst_88 = arith.constant dense<0.000000e+00> : vector<10xf32>
    %190 = vector.multi_reduction <add>, %189, %cst_88 [1] : vector<10x32xf32> to vector<10xf32>
    %191 = vector.shape_cast %190 : vector<10xf32> to vector<10x1xf32>
    %cst_89 = arith.constant 3.200000e+01 : f32
    %192 = vector.broadcast %cst_89 : f32 to vector<10x1xf32>
    %193 = arith.divf %191, %192 : vector<10x1xf32>
    %194 = vector.broadcast %186 : vector<10x1xf32> to vector<10x32xf32>
    %195 = arith.subf %178, %194 : vector<10x32xf32>
    %cst_90 = arith.constant 9.99999996E-13 : f32
    %196 = vector.broadcast %cst_90 : f32 to vector<10x1xf32>
    %197 = arith.addf %193, %196 : vector<10x1xf32>
    %198 = math.rsqrt %197 : vector<10x1xf32>
    %199 = vector.broadcast %198 : vector<10x1xf32> to vector<10x32xf32>
    %200 = arith.mulf %195, %199 : vector<10x32xf32>
    %201 = vector.broadcast %180 : vector<1x32xf32> to vector<10x32xf32>
    %202 = arith.mulf %200, %201 : vector<10x32xf32>
    %203 = vector.broadcast %182 : vector<1x32xf32> to vector<10x32xf32>
    %204 = arith.addf %202, %203 : vector<10x32xf32>
    %c1_91 = arith.constant 1 : index
    %c0_92 = arith.constant 0 : index
    %c0_93 = arith.constant 0 : index
    %205 = vector.load %arg6[%c1_91, %c0_92, %c0_93] : memref<2x32x96xbf16, #tpu.memory_space<vmem>>, vector<1x32x96xbf16>
    %206 = vector.shape_cast %205 : vector<1x32x96xbf16> to vector<32x96xbf16>
    %207 = arith.truncf %204 : vector<10x32xf32> to vector<10x32xbf16>
    %cst_94 = arith.constant dense<0.000000e+00> : vector<10x96xf32>
    %208 = tpu.matmul %207, %206, %cst_94 {dimension_numbers = #tpu.dot_dimension_numbers<[1], [0], [0], [1], [0, 0, 1, 1], [], []>} : vector<10x32xbf16>, vector<32x96xbf16>, vector<10x96xf32> -> vector<10x96xf32>
    %c1_95 = arith.constant 1 : index
    %c0_96 = arith.constant 0 : index
    %c0_97 = arith.constant 0 : index
    %209 = vector.load %arg7[%c1_95, %c0_96, %c0_97] : memref<2x1x96xf32, #tpu.memory_space<vmem>>, vector<1x1x96xf32>
    %210 = vector.shape_cast %209 : vector<1x1x96xf32> to vector<1x96xf32>
    %211 = vector.broadcast %210 : vector<1x96xf32> to vector<10x96xf32>
    %212 = arith.addf %208, %211 : vector<10x96xf32>
    %213 = vector.extract_strided_slice %212 {offsets = [0, 0], sizes = [10, 8], strides = [1, 1]} : vector<10x96xf32> to vector<10x8xf32>
    %214 = vector.extract_strided_slice %212 {offsets = [0, 32], sizes = [10, 8], strides = [1, 1]} : vector<10x96xf32> to vector<10x8xf32>
    %215 = vector.extract_strided_slice %212 {offsets = [0, 64], sizes = [10, 8], strides = [1, 1]} : vector<10x96xf32> to vector<10x8xf32>
    "tpu.trace_start"() <{level = 10 : i32, message = "td,sd->ts"}> : () -> ()
    %cst_98 = arith.constant dense<0.000000e+00> : vector<10x10xf32>
    %216 = tpu.matmul %213, %214, %cst_98 {dimension_numbers = #tpu.dot_dimension_numbers<[1], [1], [0], [0], [0, 0, 1, 0], [], []>} : vector<10x8xf32>, vector<10x8xf32>, vector<10x10xf32> -> vector<10x10xf32>
    "tpu.trace_stop"() : () -> ()
    %cst_99 = arith.constant 0.353553385 : f32
    %217 = vector.broadcast %cst_99 : f32 to vector<10x10xf32>
    %218 = arith.mulf %216, %217 : vector<10x10xf32>
    %219 = arith.addf %218, %6 : vector<10x10xf32>
    %cst_100 = arith.constant dense<0xFF800000> : vector<10xf32>
    %220 = vector.multi_reduction <maximumf>, %219, %cst_100 [1] : vector<10x10xf32> to vector<10xf32>
    %221 = vector.shape_cast %220 : vector<10xf32> to vector<10x1xf32>
    %222 = vector.broadcast %221 : vector<10x1xf32> to vector<10x10xf32>
    %223 = arith.subf %219, %222 : vector<10x10xf32>
    %224 = math.exp %223 : vector<10x10xf32>
    %cst_101 = arith.constant dense<0.000000e+00> : vector<10xf32>
    %225 = vector.multi_reduction <add>, %224, %cst_101 [1] : vector<10x10xf32> to vector<10xf32>
    %226 = vector.shape_cast %225 : vector<10xf32> to vector<10x1xf32>
    %227 = tpu.reciprocal %226 {approx = true} : vector<10x1xf32> -> vector<10x1xf32>
    %228 = vector.broadcast %227 : vector<10x1xf32> to vector<10x10xf32>
    %229 = arith.mulf %224, %228 : vector<10x10xf32>
    %cst_102 = arith.constant dense<0.000000e+00> : vector<10x8xf32>
    %230 = tpu.matmul %229, %215, %cst_102 {dimension_numbers = #tpu.dot_dimension_numbers<[1], [0], [0], [1], [0, 0, 1, 1], [], []>} : vector<10x10xf32>, vector<10x8xf32>, vector<10x8xf32> -> vector<10x8xf32>
    %231 = vector.extract_strided_slice %212 {offsets = [0, 8], sizes = [10, 8], strides = [1, 1]} : vector<10x96xf32> to vector<10x8xf32>
    %232 = vector.extract_strided_slice %212 {offsets = [0, 40], sizes = [10, 8], strides = [1, 1]} : vector<10x96xf32> to vector<10x8xf32>
    %233 = vector.extract_strided_slice %212 {offsets = [0, 72], sizes = [10, 8], strides = [1, 1]} : vector<10x96xf32> to vector<10x8xf32>
    "tpu.trace_start"() <{level = 10 : i32, message = "td,sd->ts"}> : () -> ()
    %cst_103 = arith.constant dense<0.000000e+00> : vector<10x10xf32>
    %234 = tpu.matmul %231, %232, %cst_103 {dimension_numbers = #tpu.dot_dimension_numbers<[1], [1], [0], [0], [0, 0, 1, 0], [], []>} : vector<10x8xf32>, vector<10x8xf32>, vector<10x10xf32> -> vector<10x10xf32>
    "tpu.trace_stop"() : () -> ()
    %cst_104 = arith.constant 0.353553385 : f32
    %235 = vector.broadcast %cst_104 : f32 to vector<10x10xf32>
    %236 = arith.mulf %234, %235 : vector<10x10xf32>
    %237 = arith.addf %236, %6 : vector<10x10xf32>
    %cst_105 = arith.constant dense<0xFF800000> : vector<10xf32>
    %238 = vector.multi_reduction <maximumf>, %237, %cst_105 [1] : vector<10x10xf32> to vector<10xf32>
    %239 = vector.shape_cast %238 : vector<10xf32> to vector<10x1xf32>
    %240 = vector.broadcast %239 : vector<10x1xf32> to vector<10x10xf32>
    %241 = arith.subf %237, %240 : vector<10x10xf32>
    %242 = math.exp %241 : vector<10x10xf32>
    %cst_106 = arith.constant dense<0.000000e+00> : vector<10xf32>
    %243 = vector.multi_reduction <add>, %242, %cst_106 [1] : vector<10x10xf32> to vector<10xf32>
    %244 = vector.shape_cast %243 : vector<10xf32> to vector<10x1xf32>
    %245 = tpu.reciprocal %244 {approx = true} : vector<10x1xf32> -> vector<10x1xf32>
    %246 = vector.broadcast %245 : vector<10x1xf32> to vector<10x10xf32>
    %247 = arith.mulf %242, %246 : vector<10x10xf32>
    %cst_107 = arith.constant dense<0.000000e+00> : vector<10x8xf32>
    %248 = tpu.matmul %247, %233, %cst_107 {dimension_numbers = #tpu.dot_dimension_numbers<[1], [0], [0], [1], [0, 0, 1, 1], [], []>} : vector<10x10xf32>, vector<10x8xf32>, vector<10x8xf32> -> vector<10x8xf32>
    %249 = vector.extract_strided_slice %212 {offsets = [0, 16], sizes = [10, 8], strides = [1, 1]} : vector<10x96xf32> to vector<10x8xf32>
    %250 = vector.extract_strided_slice %212 {offsets = [0, 48], sizes = [10, 8], strides = [1, 1]} : vector<10x96xf32> to vector<10x8xf32>
    %251 = vector.extract_strided_slice %212 {offsets = [0, 80], sizes = [10, 8], strides = [1, 1]} : vector<10x96xf32> to vector<10x8xf32>
    "tpu.trace_start"() <{level = 10 : i32, message = "td,sd->ts"}> : () -> ()
    %cst_108 = arith.constant dense<0.000000e+00> : vector<10x10xf32>
    %252 = tpu.matmul %249, %250, %cst_108 {dimension_numbers = #tpu.dot_dimension_numbers<[1], [1], [0], [0], [0, 0, 1, 0], [], []>} : vector<10x8xf32>, vector<10x8xf32>, vector<10x10xf32> -> vector<10x10xf32>
    "tpu.trace_stop"() : () -> ()
    %cst_109 = arith.constant 0.353553385 : f32
    %253 = vector.broadcast %cst_109 : f32 to vector<10x10xf32>
    %254 = arith.mulf %252, %253 : vector<10x10xf32>
    %255 = arith.addf %254, %6 : vector<10x10xf32>
    %cst_110 = arith.constant dense<0xFF800000> : vector<10xf32>
    %256 = vector.multi_reduction <maximumf>, %255, %cst_110 [1] : vector<10x10xf32> to vector<10xf32>
    %257 = vector.shape_cast %256 : vector<10xf32> to vector<10x1xf32>
    %258 = vector.broadcast %257 : vector<10x1xf32> to vector<10x10xf32>
    %259 = arith.subf %255, %258 : vector<10x10xf32>
    %260 = math.exp %259 : vector<10x10xf32>
    %cst_111 = arith.constant dense<0.000000e+00> : vector<10xf32>
    %261 = vector.multi_reduction <add>, %260, %cst_111 [1] : vector<10x10xf32> to vector<10xf32>
    %262 = vector.shape_cast %261 : vector<10xf32> to vector<10x1xf32>
    %263 = tpu.reciprocal %262 {approx = true} : vector<10x1xf32> -> vector<10x1xf32>
    %264 = vector.broadcast %263 : vector<10x1xf32> to vector<10x10xf32>
    %265 = arith.mulf %260, %264 : vector<10x10xf32>
    %cst_112 = arith.constant dense<0.000000e+00> : vector<10x8xf32>
    %266 = tpu.matmul %265, %251, %cst_112 {dimension_numbers = #tpu.dot_dimension_numbers<[1], [0], [0], [1], [0, 0, 1, 1], [], []>} : vector<10x10xf32>, vector<10x8xf32>, vector<10x8xf32> -> vector<10x8xf32>
    %267 = vector.extract_strided_slice %212 {offsets = [0, 24], sizes = [10, 8], strides = [1, 1]} : vector<10x96xf32> to vector<10x8xf32>
    %268 = vector.extract_strided_slice %212 {offsets = [0, 56], sizes = [10, 8], strides = [1, 1]} : vector<10x96xf32> to vector<10x8xf32>
    %269 = vector.extract_strided_slice %212 {offsets = [0, 88], sizes = [10, 8], strides = [1, 1]} : vector<10x96xf32> to vector<10x8xf32>
    "tpu.trace_start"() <{level = 10 : i32, message = "td,sd->ts"}> : () -> ()
    %cst_113 = arith.constant dense<0.000000e+00> : vector<10x10xf32>
    %270 = tpu.matmul %267, %268, %cst_113 {dimension_numbers = #tpu.dot_dimension_numbers<[1], [1], [0], [0], [0, 0, 1, 0], [], []>} : vector<10x8xf32>, vector<10x8xf32>, vector<10x10xf32> -> vector<10x10xf32>
    "tpu.trace_stop"() : () -> ()
    %cst_114 = arith.constant 0.353553385 : f32
    %271 = vector.broadcast %cst_114 : f32 to vector<10x10xf32>
    %272 = arith.mulf %270, %271 : vector<10x10xf32>
    %273 = arith.addf %272, %6 : vector<10x10xf32>
    %cst_115 = arith.constant dense<0xFF800000> : vector<10xf32>
    %274 = vector.multi_reduction <maximumf>, %273, %cst_115 [1] : vector<10x10xf32> to vector<10xf32>
    %275 = vector.shape_cast %274 : vector<10xf32> to vector<10x1xf32>
    %276 = vector.broadcast %275 : vector<10x1xf32> to vector<10x10xf32>
    %277 = arith.subf %273, %276 : vector<10x10xf32>
    %278 = math.exp %277 : vector<10x10xf32>
    %cst_116 = arith.constant dense<0.000000e+00> : vector<10xf32>
    %279 = vector.multi_reduction <add>, %278, %cst_116 [1] : vector<10x10xf32> to vector<10xf32>
    %280 = vector.shape_cast %279 : vector<10xf32> to vector<10x1xf32>
    %281 = tpu.reciprocal %280 {approx = true} : vector<10x1xf32> -> vector<10x1xf32>
    %282 = vector.broadcast %281 : vector<10x1xf32> to vector<10x10xf32>
    %283 = arith.mulf %278, %282 : vector<10x10xf32>
    %cst_117 = arith.constant dense<0.000000e+00> : vector<10x8xf32>
    %284 = tpu.matmul %283, %269, %cst_117 {dimension_numbers = #tpu.dot_dimension_numbers<[1], [0], [0], [1], [0, 0, 1, 1], [], []>} : vector<10x10xf32>, vector<10x8xf32>, vector<10x8xf32> -> vector<10x8xf32>
    %285 = tpu.concatenate %230, %248, %266, %284 in 1 : vector<10x8xf32>, vector<10x8xf32>, vector<10x8xf32>, vector<10x8xf32> -> vector<10x32xf32>
    %c1_118 = arith.constant 1 : index
    %c0_119 = arith.constant 0 : index
    %c0_120 = arith.constant 0 : index
    %286 = vector.load %arg8[%c1_118, %c0_119, %c0_120] : memref<2x32x32xbf16, #tpu.memory_space<vmem>>, vector<1x32x32xbf16>
    %287 = vector.shape_cast %286 : vector<1x32x32xbf16> to vector<32x32xbf16>
    %288 = arith.truncf %285 : vector<10x32xf32> to vector<10x32xbf16>
    %cst_121 = arith.constant dense<0.000000e+00> : vector<10x32xf32>
    %289 = tpu.matmul %288, %287, %cst_121 {dimension_numbers = #tpu.dot_dimension_numbers<[1], [0], [0], [1], [0, 0, 1, 1], [], []>} : vector<10x32xbf16>, vector<32x32xbf16>, vector<10x32xf32> -> vector<10x32xf32>
    %290 = arith.addf %178, %289 : vector<10x32xf32>
    %c1_122 = arith.constant 1 : index
    %c0_123 = arith.constant 0 : index
    %c0_124 = arith.constant 0 : index
    %291 = vector.load %arg9[%c1_122, %c0_123, %c0_124] : memref<2x1x32xf32, #tpu.memory_space<vmem>>, vector<1x1x32xf32>
    %292 = vector.shape_cast %291 : vector<1x1x32xf32> to vector<1x32xf32>
    %293 = vector.broadcast %292 : vector<1x32xf32> to vector<10x32xf32>
    %294 = arith.addf %290, %293 : vector<10x32xf32>
    %c1_125 = arith.constant 1 : index
    %c0_126 = arith.constant 0 : index
    %c0_127 = arith.constant 0 : index
    %295 = vector.load %arg10[%c1_125, %c0_126, %c0_127] : memref<2x1x32xf32, #tpu.memory_space<vmem>>, vector<1x1x32xf32>
    %296 = vector.shape_cast %295 : vector<1x1x32xf32> to vector<1x32xf32>
    %c1_128 = arith.constant 1 : index
    %c0_129 = arith.constant 0 : index
    %c0_130 = arith.constant 0 : index
    %297 = vector.load %arg11[%c1_128, %c0_129, %c0_130] : memref<2x1x32xf32, #tpu.memory_space<vmem>>, vector<1x1x32xf32>
    %298 = vector.shape_cast %297 : vector<1x1x32xf32> to vector<1x32xf32>
    %cst_131 = arith.constant dense<0.000000e+00> : vector<10xf32>
    %299 = vector.multi_reduction <add>, %294, %cst_131 [1] : vector<10x32xf32> to vector<10xf32>
    %300 = vector.shape_cast %299 : vector<10xf32> to vector<10x1xf32>
    %cst_132 = arith.constant 3.200000e+01 : f32
    %301 = vector.broadcast %cst_132 : f32 to vector<10x1xf32>
    %302 = arith.divf %300, %301 : vector<10x1xf32>
    %303 = vector.broadcast %302 : vector<10x1xf32> to vector<10x32xf32>
    %304 = arith.subf %294, %303 : vector<10x32xf32>
    %305 = arith.mulf %304, %304 : vector<10x32xf32>
    %cst_133 = arith.constant dense<0.000000e+00> : vector<10xf32>
    %306 = vector.multi_reduction <add>, %305, %cst_133 [1] : vector<10x32xf32> to vector<10xf32>
    %307 = vector.shape_cast %306 : vector<10xf32> to vector<10x1xf32>
    %cst_134 = arith.constant 3.200000e+01 : f32
    %308 = vector.broadcast %cst_134 : f32 to vector<10x1xf32>
    %309 = arith.divf %307, %308 : vector<10x1xf32>
    %310 = vector.broadcast %302 : vector<10x1xf32> to vector<10x32xf32>
    %311 = arith.subf %294, %310 : vector<10x32xf32>
    %cst_135 = arith.constant 9.99999996E-13 : f32
    %312 = vector.broadcast %cst_135 : f32 to vector<10x1xf32>
    %313 = arith.addf %309, %312 : vector<10x1xf32>
    %314 = math.rsqrt %313 : vector<10x1xf32>
    %315 = vector.broadcast %314 : vector<10x1xf32> to vector<10x32xf32>
    %316 = arith.mulf %311, %315 : vector<10x32xf32>
    %317 = vector.broadcast %296 : vector<1x32xf32> to vector<10x32xf32>
    %318 = arith.mulf %316, %317 : vector<10x32xf32>
    %319 = vector.broadcast %298 : vector<1x32xf32> to vector<10x32xf32>
    %320 = arith.addf %318, %319 : vector<10x32xf32>
    %c1_136 = arith.constant 1 : index
    %c0_137 = arith.constant 0 : index
    %c0_138 = arith.constant 0 : index
    %321 = vector.load %arg12[%c1_136, %c0_137, %c0_138] : memref<2x32x128xbf16, #tpu.memory_space<vmem>>, vector<1x32x128xbf16>
    %322 = vector.shape_cast %321 : vector<1x32x128xbf16> to vector<32x128xbf16>
    %323 = arith.truncf %320 : vector<10x32xf32> to vector<10x32xbf16>
    %cst_139 = arith.constant dense<0.000000e+00> : vector<10x128xf32>
    %324 = tpu.matmul %323, %322, %cst_139 {dimension_numbers = #tpu.dot_dimension_numbers<[1], [0], [0], [1], [0, 0, 1, 1], [], []>} : vector<10x32xbf16>, vector<32x128xbf16>, vector<10x128xf32> -> vector<10x128xf32>
    %c1_140 = arith.constant 1 : index
    %c0_141 = arith.constant 0 : index
    %c0_142 = arith.constant 0 : index
    %325 = vector.load %arg13[%c1_140, %c0_141, %c0_142] : memref<2x1x128xf32, #tpu.memory_space<vmem>>, vector<1x1x128xf32>
    %326 = vector.shape_cast %325 : vector<1x1x128xf32> to vector<1x128xf32>
    %327 = vector.broadcast %326 : vector<1x128xf32> to vector<10x128xf32>
    %328 = arith.addf %324, %327 : vector<10x128xf32>
    %329 = arith.mulf %328, %328 : vector<10x128xf32>
    %330 = arith.mulf %328, %329 : vector<10x128xf32>
    %cst_143 = arith.constant 4.471500e-02 : f32
    %331 = vector.broadcast %cst_143 : f32 to vector<10x128xf32>
    %332 = arith.mulf %331, %330 : vector<10x128xf32>
    %333 = arith.addf %328, %332 : vector<10x128xf32>
    %cst_144 = arith.constant 0.797884583 : f32
    %334 = vector.broadcast %cst_144 : f32 to vector<10x128xf32>
    %335 = arith.mulf %334, %333 : vector<10x128xf32>
    %336 = math.tanh %335 : vector<10x128xf32>
    %cst_145 = arith.constant 1.000000e+00 : f32
    %337 = vector.broadcast %cst_145 : f32 to vector<10x128xf32>
    %338 = arith.addf %337, %336 : vector<10x128xf32>
    %cst_146 = arith.constant 5.000000e-01 : f32
    %339 = vector.broadcast %cst_146 : f32 to vector<10x128xf32>
    %340 = arith.mulf %339, %338 : vector<10x128xf32>
    %341 = arith.mulf %328, %340 : vector<10x128xf32>
    %c1_147 = arith.constant 1 : index
    %c0_148 = arith.constant 0 : index
    %c0_149 = arith.constant 0 : index
    %342 = vector.load %arg14[%c1_147, %c0_148, %c0_149] : memref<2x128x32xbf16, #tpu.memory_space<vmem>>, vector<1x128x32xbf16>
    %343 = vector.shape_cast %342 : vector<1x128x32xbf16> to vector<128x32xbf16>
    %344 = arith.truncf %341 : vector<10x128xf32> to vector<10x128xbf16>
    %cst_150 = arith.constant dense<0.000000e+00> : vector<10x32xf32>
    %345 = tpu.matmul %344, %343, %cst_150 {dimension_numbers = #tpu.dot_dimension_numbers<[1], [0], [0], [1], [0, 0, 1, 1], [], []>} : vector<10x128xbf16>, vector<128x32xbf16>, vector<10x32xf32> -> vector<10x32xf32>
    %346 = arith.addf %294, %345 : vector<10x32xf32>
    %c1_151 = arith.constant 1 : index
    %c0_152 = arith.constant 0 : index
    %c0_153 = arith.constant 0 : index
    %347 = vector.load %arg15[%c1_151, %c0_152, %c0_153] : memref<2x1x32xf32, #tpu.memory_space<vmem>>, vector<1x1x32xf32>
    %348 = vector.shape_cast %347 : vector<1x1x32xf32> to vector<1x32xf32>
    %349 = vector.broadcast %348 : vector<1x32xf32> to vector<10x32xf32>
    %350 = arith.addf %346, %349 : vector<10x32xf32>
    %351 = tpu.iota {dimensions = array<i32: 1>} : vector<2x10xi32>
    %352 = tpu.iota {dimensions = array<i32: 0>} : vector<2x10xi32>
    %c5_i32 = arith.constant 5 : i32
    %353 = vector.broadcast %c5_i32 : i32 to vector<2x10xi32>
    %354 = arith.muli %352, %353 : vector<2x10xi32>
    %355 = arith.cmpi eq, %351, %354 : vector<2x10xi32>
    %356 = arith.extui %355 : vector<2x10xi1> to vector<2x10xi32>
    %357 = arith.sitofp %356 : vector<2x10xi32> to vector<2x10xf32>
    %cst_154 = arith.constant dense<0.000000e+00> : vector<2x32xf32>
    %358 = tpu.matmul %357, %350, %cst_154 {dimension_numbers = #tpu.dot_dimension_numbers<[1], [0], [0], [1], [0, 0, 1, 1], [], []>} : vector<2x10xf32>, vector<10x32xf32>, vector<2x32xf32> -> vector<2x32xf32>
    %c0_155 = arith.constant 0 : index
    %c0_156 = arith.constant 0 : index
    %359 = vector.load %arg16[%c0_155, %c0_156] : memref<1x32xf32, #tpu.memory_space<vmem>>, vector<1x32xf32>
    %c0_157 = arith.constant 0 : index
    %c0_158 = arith.constant 0 : index
    %360 = vector.load %arg17[%c0_157, %c0_158] : memref<1x32xf32, #tpu.memory_space<vmem>>, vector<1x32xf32>
    %cst_159 = arith.constant dense<0.000000e+00> : vector<2xf32>
    %361 = vector.multi_reduction <add>, %358, %cst_159 [1] : vector<2x32xf32> to vector<2xf32>
    %362 = vector.shape_cast %361 : vector<2xf32> to vector<2x1xf32>
    %cst_160 = arith.constant 3.200000e+01 : f32
    %363 = vector.broadcast %cst_160 : f32 to vector<2x1xf32>
    %364 = arith.divf %362, %363 : vector<2x1xf32>
    %365 = vector.broadcast %364 : vector<2x1xf32> to vector<2x32xf32>
    %366 = arith.subf %358, %365 : vector<2x32xf32>
    %367 = arith.mulf %366, %366 : vector<2x32xf32>
    %cst_161 = arith.constant dense<0.000000e+00> : vector<2xf32>
    %368 = vector.multi_reduction <add>, %367, %cst_161 [1] : vector<2x32xf32> to vector<2xf32>
    %369 = vector.shape_cast %368 : vector<2xf32> to vector<2x1xf32>
    %cst_162 = arith.constant 3.200000e+01 : f32
    %370 = vector.broadcast %cst_162 : f32 to vector<2x1xf32>
    %371 = arith.divf %369, %370 : vector<2x1xf32>
    %372 = vector.broadcast %364 : vector<2x1xf32> to vector<2x32xf32>
    %373 = arith.subf %358, %372 : vector<2x32xf32>
    %cst_163 = arith.constant 9.99999996E-13 : f32
    %374 = vector.broadcast %cst_163 : f32 to vector<2x1xf32>
    %375 = arith.addf %371, %374 : vector<2x1xf32>
    %376 = math.rsqrt %375 : vector<2x1xf32>
    %377 = vector.broadcast %376 : vector<2x1xf32> to vector<2x32xf32>
    %378 = arith.mulf %373, %377 : vector<2x32xf32>
    %379 = vector.broadcast %359 : vector<1x32xf32> to vector<2x32xf32>
    %380 = arith.mulf %378, %379 : vector<2x32xf32>
    %381 = vector.broadcast %360 : vector<1x32xf32> to vector<2x32xf32>
    %382 = arith.addf %380, %381 : vector<2x32xf32>
    %383 = arith.mulf %382, %382 : vector<2x32xf32>
    %cst_164 = arith.constant dense<0.000000e+00> : vector<2xf32>
    %384 = vector.multi_reduction <add>, %383, %cst_164 [1] : vector<2x32xf32> to vector<2xf32>
    %385 = vector.shape_cast %384 : vector<2xf32> to vector<2x1xf32>
    %386 = math.sqrt %385 : vector<2x1xf32>
    %cst_165 = arith.constant 9.99999996E-13 : f32
    %387 = vector.broadcast %cst_165 : f32 to vector<2x1xf32>
    %388 = arith.maximumf %386, %387 : vector<2x1xf32>
    %389 = vector.broadcast %388 : vector<2x1xf32> to vector<2x32xf32>
    %390 = arith.divf %382, %389 : vector<2x32xf32>
    %c0_166 = arith.constant 0 : index
    %c0_167 = arith.constant 0 : index
    %391 = vector.load %arg20[%c0_166, %c0_167] : memref<2x32xf32, #tpu.memory_space<vmem>>, vector<2x32xf32>
    tpu.vector_store %arg20[%c0_166, %c0_167], %390 {strides = array<i32>} : memref<2x32xf32, #tpu.memory_space<vmem>>, vector<2x32xf32>,
    %c0_168 = arith.constant 0 : index
    %c0_169 = arith.constant 0 : index
    %392 = vector.load %arg18[%c0_168, %c0_169] : memref<32x16xf32, #tpu.memory_space<vmem>>, vector<32x16xf32>
    %cst_170 = arith.constant 1.000000e+00 : f32
    %393 = vector.broadcast %cst_170 : f32 to vector<1x32xf32>
    %394 = arith.mulf %392, %392 : vector<32x16xf32>
    %cst_171 = arith.constant dense<0.000000e+00> : vector<1x16xf32>
    %395 = tpu.matmul %393, %394, %cst_171 {dimension_numbers = #tpu.dot_dimension_numbers<[1], [0], [0], [1], [0, 0, 1, 1], [], []>} : vector<1x32xf32>, vector<32x16xf32>, vector<1x16xf32> -> vector<1x16xf32>
    %cst_172 = arith.constant 1.000000e-24 : f32
    %396 = vector.broadcast %cst_172 : f32 to vector<1x16xf32>
    %397 = arith.maximumf %395, %396 : vector<1x16xf32>
    %398 = math.rsqrt %397 : vector<1x16xf32>
    %cst_173 = arith.constant dense<0.000000e+00> : vector<2x16xf32>
    %399 = tpu.matmul %390, %392, %cst_173 {dimension_numbers = #tpu.dot_dimension_numbers<[1], [0], [0], [1], [0, 0, 1, 1], [], []>} : vector<2x32xf32>, vector<32x16xf32>, vector<2x16xf32> -> vector<2x16xf32>
    %400 = vector.broadcast %398 : vector<1x16xf32> to vector<2x16xf32>
    %401 = arith.mulf %399, %400 : vector<2x16xf32>
    %cst_174 = arith.constant -1.000000e+00 : f32
    %cst_175 = arith.constant 1.000000e+00 : f32
    %402 = vector.broadcast %cst_174 : f32 to vector<2x16xf32>
    %403 = arith.maximumf %402, %401 : vector<2x16xf32>
    %404 = vector.broadcast %cst_175 : f32 to vector<2x16xf32>
    %405 = arith.minimumf %404, %403 : vector<2x16xf32>
    %406 = arith.mulf %405, %405 : vector<2x16xf32>
    %cst_176 = arith.constant 1.000000e+00 : f32
    %407 = vector.broadcast %cst_176 : f32 to vector<2x16xf32>
    %408 = arith.subf %407, %406 : vector<2x16xf32>
    %cst_177 = arith.constant 0.000000e+00 : f32
    %409 = vector.broadcast %cst_177 : f32 to vector<2x16xf32>
    %410 = arith.maximumf %408, %409 : vector<2x16xf32>
    %411 = math.sqrt %410 : vector<2x16xf32>
    %cst_178 = arith.constant 0.87758255 : f32
    %412 = vector.broadcast %cst_178 : f32 to vector<2x16xf32>
    %413 = arith.mulf %405, %412 : vector<2x16xf32>
    %cst_179 = arith.constant 0.47942555 : f32
    %414 = vector.broadcast %cst_179 : f32 to vector<2x16xf32>
    %415 = arith.mulf %411, %414 : vector<2x16xf32>
    %416 = arith.subf %413, %415 : vector<2x16xf32>
    %cst_180 = arith.constant -0.87758255 : f32
    %417 = vector.broadcast %cst_180 : f32 to vector<2x16xf32>
    %418 = arith.cmpf ogt, %405, %417 : vector<2x16xf32>
    %cst_181 = arith.constant 0.239712775 : f32
    %419 = vector.broadcast %cst_181 : f32 to vector<2x16xf32>
    %420 = arith.subf %405, %419 : vector<2x16xf32>
    %421 = arith.select %418, %416, %420 : vector<2x16xi1>, vector<2x16xf32>
    %422 = tpu.iota {dimensions = array<i32: 1>} : vector<2x16xi32>
    %c0_182 = arith.constant 0 : index
    %c0_183 = arith.constant 0 : index
    %423 = vector.load %arg19[%c0_182, %c0_183] : memref<2x1xi32, #tpu.memory_space<vmem>>, vector<2x1xi32>
    %424 = vector.broadcast %423 : vector<2x1xi32> to vector<2x16xi32>
    %425 = arith.cmpi eq, %422, %424 : vector<2x16xi32>
    %426 = arith.extui %425 : vector<2x16xi1> to vector<2x16xi32>
    %427 = arith.sitofp %426 : vector<2x16xi32> to vector<2x16xf32>
    %428 = arith.mulf %427, %421 : vector<2x16xf32>
    %cst_184 = arith.constant 1.000000e+00 : f32
    %429 = vector.broadcast %cst_184 : f32 to vector<2x16xf32>
    %430 = arith.subf %429, %427 : vector<2x16xf32>
    %431 = arith.mulf %430, %405 : vector<2x16xf32>
    %432 = arith.addf %428, %431 : vector<2x16xf32>
    %cst_185 = arith.constant 3.200000e+01 : f32
    %433 = vector.broadcast %cst_185 : f32 to vector<2x16xf32>
    %434 = arith.mulf %432, %433 : vector<2x16xf32>
    %c0_186 = arith.constant 0 : index
    %c0_187 = arith.constant 0 : index
    %435 = vector.load %arg21[%c0_186, %c0_187] : memref<2x16xf32, #tpu.memory_space<vmem>>, vector<2x16xf32>
    tpu.vector_store %arg21[%c0_186, %c0_187], %434 {strides = array<i32>} : memref<2x16xf32, #tpu.memory_space<vmem>>, vector<2x16xf32>,
    return
  }
}

</mosaic_0001>

<bundles_post_ra>
// kernel: vit_arcface_forward.1
= control target key start
LH: loop header
LB: loop body
LE: loop exit
PB: predicated region body
PF: predicated region fallthrough
CT: control target
= control target key end

     0   :  { %s4662_s0 = inlined_call_operand.vmem [shape: f32[10,192], index: 0, kind: input, shape index: {}]   ;;  %s4663_s1 = inlined_call_operand.vmem [shape: f32[10,32], index: 1, kind: input, shape index: {}]   ;;  %s4664_s2 = inlined_call_operand.vmem [shape: f32[10,10], index: 2, kind: input, shape index: {}]   ;;  %s4665_s3 = inlined_call_operand.vmem [shape: bf16[192,32], index: 3, kind: input, shape index: {}]   ;;  %s4666_s4 = inlined_call_operand.vmem [shape: f32[2,1,32], index: 4, kind: input, shape index: {}]   ;;  %s4667_s5 = inlined_call_operand.vmem [shape: f32[2,1,32], index: 5, kind: input, shape index: {}]   ;;  %s4668_s6 = inlined_call_operand.vmem [shape: bf16[2,32,96], index: 6, kind: input, shape index: {}]   ;;  %s4669_s7 = inlined_call_operand.vmem [shape: f32[2,1,96], index: 7, kind: input, shape index: {}]   ;;  %s4670_s8 = inlined_call_operand.vmem [shape: bf16[2,32,32], index: 8, kind: input, shape index: {}]   ;;  %s4671_s9 = inlined_call_operand.vmem [shape: f32[2,1,32], index: 9, kind: input, shape index: {}]   ;;  %s4672_s10 = inlined_call_operand.vmem [shape: f32[2,1,32], index: 10, kind: input, shape index: {}]   ;;  %s4673_s11 = inlined_call_operand.vmem [shape: f32[2,1,32], index: 11, kind: input, shape index: {}]   ;;  %s4674_s12 = inlined_call_operand.vmem [shape: bf16[2,32,128], index: 12, kind: input, shape index: {}]   ;;  %s4675_s13 = inlined_call_operand.vmem [shape: f32[2,1,128], index: 13, kind: input, shape index: {}]   ;;  %s4676_s14 = inlined_call_operand.vmem [shape: bf16[2,128,32], index: 14, kind: input, shape index: {}]   ;;  %s4677_s15 = inlined_call_operand.vmem [shape: f32[2,1,32], index: 15, kind: input, shape index: {}]   ;;  %s4678_s16 = inlined_call_operand.vmem [shape: f32[1,32], index: 16, kind: input, shape index: {}]   ;;  %s4679_s17 = inlined_call_operand.vmem [shape: f32[1,32], index: 17, kind: input, shape index: {}]   ;;  %s4680_s18 = inlined_call_operand.vmem [shape: f32[32,16], index: 18, kind: input, shape index: {}]   ;;  %s4681_s19 = inlined_call_operand.vmem [shape: s32[2,1], index: 19, kind: input, shape index: {}]   ;;  %s4682_s20 = inlined_call_operand.hbm [shape: f32[2,32], index: 20, kind: output, shape index: {0}]   ;;  %s4683_s21 = inlined_call_operand.hbm [shape: f32[2,16], index: 21, kind: output, shape index: {1}]  }
   0x1   :  { %4707 = sst [smem:[#allocation8_spill]] %s4662_s0 }
   0x2   :  { %4708 = sst [smem:[#allocation9_spill]] %s4663_s1 }
   0x3   :  { %4709 = sst [smem:[#allocation10_spill]] %s4664_s2 }
   0x4   :  { %4710 = sst [smem:[#allocation11_spill]] %s4665_s3 }
   0x5   :  { %4711 = sst [smem:[#allocation12_spill]] %s4666_s4 }
   0x6   :  { %4712 = sst [smem:[#allocation13_spill]] %s4667_s5 }
   0x7   :  { %27 = vsyncpa [#allocation3], 0  ;;  %s4713_s26 = sld [smem:[#allocation11_spill]]  ;;  %v3892_v1 = vmov 0   ;;  %vm174_vm0 = vcmask 523264  }
   0x8   :  { %178 = vmatprep.subr.bf16.mxu0 %v3892_v1  ;;  %3706 = vset.pattern.permute.xlu1 %v3892_v1  ;;  %s4714_s22 = sld [smem:[#allocation8_spill]] }
   0x9   :  { %3707 = vset.pattern.permute.xlu0 %v3892_v1 }
   0xd   :  { %v3708_v0 = vld [vmem:[%s4713_s26 + $0x38] sm:$0xff]   ;;  %v3709_v2 = vld [vmem:[%s4713_s26 + $0x30] sm:$0xff]   ;;  %v3710_v3 = vld [vmem:[%s4713_s26 + $0x28] sm:$0xff]  }
   0xe   :  { %179 = vmatpush1.bf16.msra.mxu0 %v3708_v0  ;;  %v3711_v4 = vld [vmem:[%s4713_s26 + $0x20] sm:$0xff]   ;;  %v71_v5 = vld [vmem:[%s4714_s22 + $0x8] sm:$0xff]  ;;  %v73_v6 = vld [vmem:[%s4714_s22 + $0x18] sm:$0x3] }
   0xf   :  { %180 = vmatprep.subr.bf16.mxu0 %v3892_v1  ;;  %v3712_v7 = vld [vmem:[%s4713_s26 + $0x18] sm:$0xff]   ;;  %v99_v8 = vpack.c.bf16 %v73_v6, %v71_v5  ;;  %v3713_v9 = vld [vmem:[%s4713_s26 + $0x10] sm:$0xff]   ;;  %v3714_v10 = vld [vmem:[%s4713_s26 + $0x8] sm:$0xff]  }
  0x10   :  { %v3715_v11 = vld [vmem:[%s4713_s26] sm:$0xff]   ;;  %v3716_v12 = vld [vmem:[%s4713_s26 + $0x58] sm:$0xff]  }
  0x11   :  { %3161 = vmatprep.mubr.msk.bf16.mxu0 %vm174_vm0, %v99_v8 }
  0x12   :  { %181 = vmatpush1.bf16.msra.mxu0 %v3709_v2 }
  0x13   :  { %182 = vmatprep.subr.bf16.mxu0 %v3892_v1 }
  0x16   :  { %183 = vmatpush1.bf16.msra.mxu0 %v3710_v3 }
  0x17   :  { %184 = vmatprep.subr.bf16.mxu0 %v3892_v1 }
  0x1a   :  { %185 = vmatpush1.bf16.msra.mxu0 %v3711_v4 }
  0x1b   :  { %186 = vmatprep.subr.bf16.mxu0 %v3892_v1 }
  0x1e   :  { %187 = vmatpush1.bf16.msra.mxu0 %v3712_v7 }
  0x1f   :  { %188 = vmatprep.subr.bf16.mxu0 %v3892_v1 }
  0x22   :  { %189 = vmatpush1.bf16.msra.mxu0 %v3713_v9 }
  0x23   :  { %190 = vmatprep.subr.bf16.mxu0 %v3892_v1 }
  0x26   :  { %191 = vmatpush1.bf16.msra.mxu0 %v3714_v10 }
  0x27   :  { %192 = vmatprep.subr.bf16.mxu0 %v3892_v1 }
  0x2a   :  { %193 = vmatpush1.bf16.msra.mxu0 %v3715_v11 }
  0x2b   :  { %202 = vmatprep.subr.bf16.mxu0 %v3892_v1 }
  0x2c   :  { %28 = vsyncpa [#allocation5], 0  ;;  %v3717_v13 = vld [vmem:[%s4713_s26 + $0x50] sm:$0xff]   ;;  %v3718_v14 = vld [vmem:[%s4713_s26 + $0x48] sm:$0xff]   ;;  %s4715_s30 = sld [smem:[#allocation9_spill]]  ;;  %vm223_vm1 = vcmask 261120  }
  0x2d   :  { %v3719_v15 = vld [vmem:[%s4713_s26 + $0x40] sm:$0xff]   ;;  %v72_v17 = vld [vmem:[%s4714_s22 + $0x10] sm:$0x3]  ;;  %vm227_vm2 = vcmask 254976   ;;  %v3720_v39 = vld [vmem:[%s4668_s6 + $0x8] sm:$0xff]   ;;  %v3893_v40 = vmov 0.0  }
  0x2e   :  { %203 = vmatpush2.bf16.msra.mxu0 %v3716_v12  ;;  %v70_v16 = vld [vmem:[%s4714_s22] sm:$0xff]  ;;  %3427 = vmatprep.subr.bf16.mxu1 %v3893_v40  ;;  %vm3894_vm3 = vmmov 0   ;;  %s4716_s27 = sld [smem:[#allocation12_spill]]  ;;  %vm342_vm4 = vcmask 64512   ;;  %vm434_vm5 = vcmask 74752   ;;  %vm430_vm6 = vcmask 80896  }
  0x2f   :  { %204 = vmatprep.subr.bf16.mxu0 %v3892_v1  ;;  %v98_v18 = vpack.c.bf16 %v72_v17, %v70_v16  ;;  %3431 = vmatprep.mubr.msk.bf16.mxu1 %vm3894_vm3, %v3893_v40  ;;  %v3721_v41 = vld [vmem:[%s4668_s6] sm:$0xff]   ;;  %s4717_s29 = sld [smem:[#allocation13_spill]]  ;;  %s3896_s24 = smov 64   ;;  %vm465_vm7 = vcmask 1041408   ;;  %vm1184_vm8 = vcmask 130048   ;;  %vm1187_vm9 = vcmask 195584  }
  0x30   :  { %3428 = vmatpush3.bf16.msra.mxu1 %v3720_v39  ;;  %v3164_v59 = vld [vmem:[%s4669_s7] ss:$0 sm:$0xff]  ;;  %s4718_s22 = sld [smem:[#allocation10_spill]]  ;;  %s3897_s2 = smov 88  }
  0x31   :  { %3429 = vmatprep.subr.bf16.mxu1 %v3893_v40  ;;  %s4705_s25 = smov 120   ;;  %s4701_s3 = smov 56  }
  0x32   :  { %205 = vmatpush2.bf16.msra.mxu0 %v3717_v13  ;;  %v100_v19 = vld [vmem:[%s4715_s30] sm:$0xff]  ;;  %v101_v23 = vld [vmem:[%s4715_s30 + $0x8] sm:$0x3]  ;;  %s3895_s30 = smov 96   ;;  %s3900_s28 = smov 80  }
  0x33   :  { %206 = vmatprep.subr.bf16.mxu0 %v3892_v1  ;;  %s4703_s0 = smov 112   ;;  %s4698_s4 = smov 48  }
  0x34   :  { %3430 = vmatpush3.bf16.msra.mxu1 %v3721_v41  ;;  %v3162_v50 = vld [vmem:[%s4716_s27] ss:$0 sm:$0xff]  ;;  %s4696_s26 = smov 72   ;;  %s4690_s5 = smov 104  }
  0x35   :  { %v3163_v54 = vld [vmem:[%s4717_s29] ss:$0 sm:$0xff]  ;;  %s4694_s23 = smov 40   ;;  %s4693_s1 = smov 8  }
  0x36   :  { %207 = vmatpush2.bf16.msra.mxu0 %v3718_v14  ;;  %v4127_v5 = vld [vmem:[%s4718_s22 + $0x8] sm:$0x3]  ;;  %v4132_v8 = vld [vmem:[%s4718_s22] sm:$0xff] }
  0x37   :  { %208 = vmatprep.subr.bf16.mxu0 %v3892_v1 }
  0x3a   :  { %209 = vmatpush2.bf16.msra.mxu0 %v3719_v15 }
  0x3d   :  { %211 = vmatmul.mubr.bf16.vlgmr.msra.gmra.mxu0 %v98_v18 }
  0xfd   :  { %v212_v20 = vpop.f32.mrf.mxu0 }
  0xfe   :  { %v4073_v21 = vadd.f32 %v212_v20, %v100_v19 }
  0xff   :  { %v214_v22 = vpop.f32.mrf.mxu0 }
 0x100   :  { %v224_v24 = vsel %vm223_vm1, %v4073_v21, 0.0 }
 0x101   :  { %v215_v25 = vpop.f32.mrf.mxu0  ;;  %225 = vadd.xlane.f32.xlu0 %v224_v24 }
 0x102   :  { %v4080_v26 = vadd.f32 %v215_v25, %v101_v23 }
 0x103   :  { %v217_v27 = vpop.f32.mrf.mxu0 }
 0x104   :  { %v228_v28 = vsel %vm227_vm2, %v4080_v26, 0.0 }
 0x105   :  { %229 = vadd.xlane.f32.xlu0 %v228_v28 }
 0x18a   :  { %v226_v29 = vpop.xlane.xlu0 %225 }
 0x18b   :  { %v232_v30 = vmul.f32 0.03125, %v226_v29 }
 0x18d   :  { %v234_v31 = vsub.f32 %v4073_v21, %v232_v30 }
 0x18e   :  { %v230_v32 = vpop.xlane.xlu0 %229 }
 0x18f   :  { %v233_v33 = vmul.f32 0.03125, %v230_v32  ;;  %v236_v34 = vmul.f32 %v234_v31, %v234_v31 }
 0x191   :  { %v235_v35 = vsub.f32 %v4080_v26, %v233_v33  ;;  %v238_v36 = vsel %vm223_vm1, %v236_v34, 0.0 }
 0x192   :  { %239 = vadd.xlane.f32.xlu1 %v238_v36 }
 0x193   :  { %v237_v37 = vmul.f32 %v235_v35, %v235_v35 }
 0x195   :  { %v241_v38 = vsel %vm227_vm2, %v237_v37, 0.0 }
 0x196   :  { %242 = vadd.xlane.f32.xlu1 %v241_v38 }
 0x21b   :  { %v240_v42 = vpop.xlane.xlu1 %239 }
 0x21c   :  { %v244_v43 = vmul.f32 0.03125, %v240_v42 }
 0x21e   :  { %v246_v44 = vadd.f32 1e-12, %v244_v43 }
 0x21f   :  { %v243_v45 = vpop.xlane.xlu1 %242 }
 0x220   :  { %3748 = vrsqrt.f32 %v246_v44  ;;  %v245_v46 = vmul.f32 0.03125, %v243_v45 }
 0x222   :  { %v247_v47 = vadd.f32 1e-12, %v245_v46 }
 0x224   :  { %3750 = vrsqrt.f32 %v247_v47 }
 0x22d   :  { %v3749_v48 = vpop.eup %3748 }
 0x22e   :  { %v250_v49 = vmul.f32 %v3749_v48, %v234_v31 }
 0x230   :  { %v258_v53 = vmul.f32 %v3162_v50, %v250_v49 }
 0x231   :  { %v3751_v51 = vpop.eup %3750 }
 0x232   :  { %v251_v52 = vmul.f32 %v3751_v51, %v235_v35  ;;  %v266_v56 = vadd.f32 %v3163_v54, %v258_v53 }
 0x234   :  { %v259_v55 = vmul.f32 %v3162_v50, %v251_v52 }
 0x236   :  { %v267_v57 = vadd.f32 %v3163_v54, %v259_v55 }
 0x238   :  { %v272_v58 = vpack.c.bf16 %v267_v57, %v266_v56 }
 0x23a   :  { %3432 = vmatmul.mubr.msk.bf16.vlgmr.msra.gmra.mxu1 %vm223_vm1, %v272_v58 }
 0x2fa   :  { %v329_v60 = vpop.f32.mrf.mxu1 }
 0x2fb   :  { %v4108_v61 = vadd.f32 %v3164_v59, %v329_v60 }
 0x2fc   :  { %v3433_v62 = vpop.f32.mrf.mxu1 }
 0x2fd   :  { %338 = vrot.lane.b32.xlu1 %v4108_v61, %s3895_s30  ;;  %3439 = vmatprep.mubr.msk.f32.mxu0 %vm342_vm4, %v4108_v61 }
 0x2fe   :  { %v332_v63 = vpop.f32.mrf.mxu1 }
 0x2ff   :  { %v4114_v0 = vadd.f32 %v3164_v59, %v332_v63 }
 0x300   :  { %v3434_v1 = vpop.f32.mrf.mxu1 }
 0x301   :  { %340 = vrot.lane.b32.xlu0 %v4114_v0, %s3895_s30 }
 0x36f   :  { %v339_v3 = vpop.permute.xlu1 %338 }
 0x373   :  { %v341_v2 = vpop.permute.xlu0 %340 }
 0x374   :  { %3435 = vmatprep.subr.msk.mxu0 %vm342_vm4, %v341_v2 }
 0x375   :  { %3436 = vmatpush3.xpose.msk.msra.mxu0 %vm342_vm4, %v341_v2 }
 0x376   :  { %3437 = vmatprep.subr.msk.mxu0 %vm342_vm4, %v339_v3 }
 0x379   :  { %3438 = vmatpush3.xpose.msk.msra.mxu0 %vm342_vm4, %v339_v3 }
 0x37c   :  { %3440 = vmatmul.mubr.msk.f32.vlgmr.msra.gmra.mxu0 %vm342_vm4, %v4114_v0 }
 0x43c   :  { %v3441_v4 = vpop.f32.mrf.mxu0 }
 0x43d   :  { %v427_v6 = vmul.f32 0.35355338, %v3441_v4 }
 0x43e   :  { %v417_v7 = vpop.f32.mrf.mxu0 }
 0x43f   :  { %v426_v9 = vmul.f32 0.35355338, %v417_v7  ;;  %v429_v10 = vadd.f32 %v427_v6, %v4127_v5 }
 0x441   :  { %v435_v11 = vsel %vm434_vm5, %v429_v10, -inf  ;;  %v428_v12 = vadd.f32 %v426_v9, %v4132_v8 }
 0x442   :  { %436 = vmax.xlane.f32.xlu0 %v435_v11 }
 0x443   :  { %v431_v13 = vsel %vm430_vm6, %v428_v12, -inf }
 0x444   :  { %432 = vmax.xlane.f32.xlu1 %v431_v13 }
 0x4cb   :  { %v437_v14 = vpop.xlane.xlu0 %436 }
 0x4cc   :  { %v439_v15 = vsub.f32 %v429_v10, %v437_v14 }
 0x4cd   :  { %v433_v16 = vpop.xlane.xlu1 %432 }
 0x4ce   :  { %v442_v17 = vmul.f32 1.442695, %v439_v15  ;;  %v438_v18 = vsub.f32 %v428_v12, %v433_v16 }
 0x4d0   :  { %3752 = vpow2.f32 %v442_v17  ;;  %v440_v19 = vmul.f32 1.442695, %v438_v18 }
 0x4d2   :  { %3754 = vpow2.f32 %v440_v19 }
 0x4dd   :  { %v3753_v20 = vpop.eup %3752 }
 0x4de   :  { %v447_v22 = vsel %vm434_vm5, %v3753_v20, 0.0 }
 0x4df   :  { %v3755_v23 = vpop.eup %3754  ;;  %448 = vadd.xlane.f32.xlu1 %v447_v22 }
 0x4e0   :  { %v444_v24 = vsel %vm430_vm6, %v3755_v23, 0.0 }
 0x4e1   :  { %445 = vadd.xlane.f32.xlu0 %v444_v24 }
 0x4f0   :  { %454 = vrot.lane.b32.xlu1 %v4108_v61, %s3896_s24 }
 0x4f4   :  { %549 = vrot.lane.b32.xlu1 %v4114_v0, %s3897_s2 }
 0x4f7   :  { %456 = vrot.lane.b32.xlu0 %v4114_v0, %s3896_s24 }
 0x4f8   :  { %547 = vrot.lane.b32.xlu1 %v4108_v61, %s3897_s2 }
 0x4fb   :  { %543 = vrot.lane.b32.xlu0 %v4108_v61, %s4705_s25 }
 0x4fc   :  { %545 = vrot.lane.b32.xlu1 %v4114_v0, %s4705_s25 }
 0x568   :  { %v449_v25 = vpop.xlane.xlu1 %448 }
 0x569   :  { %3756 = vrcp.f32 %v449_v25 }
 0x56a   :  { %v446_v27 = vpop.xlane.xlu0 %445 }
 0x56b   :  { %3758 = vrcp.f32 %v446_v27 }
 0x56c   :  { %v455_v28 = vpop.permute.xlu1 %454 }
 0x56e   :  { %v457_v29 = vpop.permute.xlu0 %456 }
 0x56f   :  { %3442 = vmatprep.subr.msk.mxu1 %vm465_vm7, %v457_v29 }
 0x570   :  { %3443 = vmatpush3.msk.msra.mxu1 %vm465_vm7, %v457_v29  ;;  %v550_v30 = vpop.permute.xlu1 %549 }
 0x571   :  { %3444 = vmatprep.subr.mxu1 %v455_v28 }
 0x572   :  { %3445 = vmatpush3.msra.mxu1 %v455_v28  ;;  %v544_v35 = vpop.permute.xlu0 %543 }
 0x573   :  { %3449 = vmatprep.subr.msk.mxu1 %vm342_vm4, %v550_v30 }
 0x574   :  { %v548_v36 = vpop.permute.xlu1 %547 }
 0x576   :  { %v3757_v31 = vpop.eup %3756 }
 0x577   :  { %v453_v34 = vmul.f32 %v3757_v31, %v3753_v20 }
 0x578   :  { %v3759_v32 = vpop.eup %3758  ;;  %v546_v37 = vpop.permute.xlu1 %545 }
 0x579   :  { %v452_v33 = vmul.f32 %v3759_v32, %v3755_v23 }
 0x57b   :  { %3446 = vmatprep.mubr.msk.f32.mxu1 %vm430_vm6, %v452_v33 }
 0x57c   :  { %3447 = vmatmul.mubr.msk.f32.vlgmr.msra.gmra.mxu1 %vm430_vm6, %v453_v34 }
 0x57d   :  { %3450 = vmatpush3.xpose.msk.msra.mxu1 %vm342_vm4, %v550_v30  ;;  %3453 = vmatprep.mubr.msk.f32.mxu1 %vm342_vm4, %v544_v35 }
 0x57e   :  { %3451 = vmatprep.subr.msk.mxu1 %vm342_vm4, %v548_v36 }
 0x581   :  { %3452 = vmatpush3.xpose.msk.msra.mxu1 %vm342_vm4, %v548_v36 }
 0x584   :  { %3454 = vmatmul.mubr.msk.f32.vlgmr.msra.gmra.mxu1 %vm342_vm4, %v546_v37 }
 0x63c   :  { %v4162_v38 = vpop.f32.mrf.mxu1 }
 0x63e   :  { %v4164_v39 = vpop.f32.mrf.mxu1 }
 0x644   :  { %v3455_v41 = vpop.f32.mrf.mxu1 }
 0x645   :  { %v635_v42 = vmul.f32 0.35355338, %v3455_v41 }
 0x646   :  { %v625_v43 = vpop.f32.mrf.mxu1 }
 0x647   :  { %v634_v44 = vmul.f32 0.35355338, %v625_v43  ;;  %v637_v45 = vadd.f32 %v635_v42, %v4127_v5 }
 0x649   :  { %v641_v46 = vsel %vm434_vm5, %v637_v45, -inf  ;;  %v636_v47 = vadd.f32 %v634_v44, %v4132_v8 }
 0x64a   :  { %642 = vmax.xlane.f32.xlu1 %v641_v46 }
 0x64b   :  { %v638_v48 = vsel %vm430_vm6, %v636_v47, -inf }
 0x64c   :  { %639 = vmax.xlane.f32.xlu0 %v638_v48 }
 0x65b   :  { %660 = vrot.lane.b32.xlu1 %v4108_v61, %s4701_s3 }
 0x65f   :  { %754 = vrot.lane.b32.xlu1 %v4114_v0, %s3900_s28 }
 0x663   :  { %752 = vrot.lane.b32.xlu1 %v4108_v61, %s3900_s28 }
 0x667   :  { %750 = vrot.lane.b32.xlu1 %v4114_v0, %s4703_s0 }
 0x6d3   :  { %v643_v49 = vpop.xlane.xlu1 %642 }
 0x6d4   :  { %v645_v50 = vsub.f32 %v637_v45, %v643_v49 }
 0x6d5   :  { %v640_v51 = vpop.xlane.xlu0 %639 }
 0x6d6   :  { %v648_v52 = vmul.f32 1.442695, %v645_v50  ;;  %v644_v53 = vsub.f32 %v636_v47, %v640_v51 }
 0x6d7   :  { %v661_v62 = vpop.permute.xlu1 %660 }
 0x6d8   :  { %3760 = vpow2.f32 %v648_v52  ;;  %v646_v54 = vmul.f32 1.442695, %v644_v53 }
 0x6da   :  { %3762 = vpow2.f32 %v646_v54 }
 0x6db   :  { %v755_v1 = vpop.permute.xlu1 %754 }
 0x6df   :  { %v753_v9 = vpop.permute.xlu1 %752 }
 0x6e3   :  { %v751_v10 = vpop.permute.xlu1 %750 }
 0x6e5   :  { %v3761_v55 = vpop.eup %3760 }
 0x6e6   :  { %v653_v56 = vsel %vm434_vm5, %v3761_v55, 0.0 }
 0x6e7   :  { %v3763_v57 = vpop.eup %3762  ;;  %654 = vadd.xlane.f32.xlu0 %v653_v56 }
 0x6e8   :  { %v650_v58 = vsel %vm430_vm6, %v3763_v57, 0.0 }
 0x6eb   :  { %651 = vadd.xlane.f32.xlu0 %v650_v58 }
 0x701   :  { %662 = vrot.lane.b32.xlu0 %v4114_v0, %s4701_s3  ;;  %s4725_s3 = smov 40  }
 0x705   :  { %748 = vrot.lane.b32.xlu0 %v4108_v61, %s4703_s0  ;;  %s4724_s0 = smov 104  }
 0x770   :  { %v655_v59 = vpop.xlane.xlu0 %654 }
 0x771   :  { %3764 = vrcp.f32 %v655_v59 }
 0x774   :  { %v652_v60 = vpop.xlane.xlu0 %651 }
 0x775   :  { %3766 = vrcp.f32 %v652_v60 }
 0x778   :  { %v663_v63 = vpop.permute.xlu0 %662 }
 0x779   :  { %3456 = vmatprep.subr.msk.mxu1 %vm465_vm7, %v663_v63 }
 0x77a   :  { %3457 = vmatpush3.msk.msra.mxu1 %vm465_vm7, %v663_v63 }
 0x77b   :  { %3458 = vmatprep.subr.mxu1 %v661_v62 }
 0x77c   :  { %3459 = vmatpush3.msra.mxu1 %v661_v62  ;;  %v749_v7 = vpop.permute.xlu0 %748 }
 0x77d   :  { %3463 = vmatprep.subr.msk.mxu1 %vm342_vm4, %v755_v1 }
 0x77e   :  { %v3765_v2 = vpop.eup %3764 }
 0x77f   :  { %v659_v6 = vmul.f32 %v3765_v2, %v3761_v55 }
 0x782   :  { %v3767_v3 = vpop.eup %3766 }
 0x783   :  { %v658_v4 = vmul.f32 %v3767_v3, %v3763_v57 }
 0x785   :  { %3460 = vmatprep.mubr.msk.f32.mxu1 %vm430_vm6, %v658_v4 }
 0x786   :  { %3461 = vmatmul.mubr.msk.f32.vlgmr.msra.gmra.mxu1 %vm430_vm6, %v659_v6 }
 0x787   :  { %3464 = vmatpush3.xpose.msk.msra.mxu1 %vm342_vm4, %v755_v1  ;;  %3467 = vmatprep.mubr.msk.f32.mxu1 %vm342_vm4, %v749_v7 }
 0x788   :  { %3465 = vmatprep.subr.msk.mxu1 %vm342_vm4, %v753_v9 }
 0x78b   :  { %3466 = vmatpush3.xpose.msk.msra.mxu1 %vm342_vm4, %v753_v9 }
 0x78e   :  { %3468 = vmatmul.mubr.msk.f32.vlgmr.msra.gmra.mxu1 %vm342_vm4, %v751_v10 }
 0x846   :  { %v4194_v11 = vpop.f32.mrf.mxu1 }
 0x848   :  { %v4196_v12 = vpop.f32.mrf.mxu1 }
 0x849   :  { %v3676_v13 = vpack.i.bf16 %v4194_v11, %v4196_v12 }
 0x84e   :  { %v3469_v14 = vpop.f32.mrf.mxu1 }
 0x84f   :  { %v840_v15 = vmul.f32 0.35355338, %v3469_v14 }
 0x850   :  { %v830_v16 = vpop.f32.mrf.mxu1 }
 0x851   :  { %v839_v17 = vmul.f32 0.35355338, %v830_v16  ;;  %v842_v18 = vadd.f32 %v840_v15, %v4127_v5 }
 0x853   :  { %v846_v19 = vsel %vm434_vm5, %v842_v18, -inf  ;;  %v841_v20 = vadd.f32 %v839_v17, %v4132_v8  ;;  %v3723_v17 = vld [vmem:[%s4670_s8] sm:$0xff]  }
 0x854   :  { %847 = vmax.xlane.f32.xlu1 %v846_v19 }
 0x855   :  { %v843_v22 = vsel %vm430_vm6, %v841_v20, -inf }
 0x856   :  { %844 = vmax.xlane.f32.xlu0 %v843_v22 }
 0x865   :  { %865 = vrot.lane.b32.xlu1 %v4108_v61, %s4698_s4 }
 0x869   :  { %959 = vrot.lane.b32.xlu1 %v4114_v0, %s4696_s26 }
 0x86d   :  { %957 = vrot.lane.b32.xlu1 %v4108_v61, %s4696_s26 }
 0x871   :  { %955 = vrot.lane.b32.xlu1 %v4114_v0, %s4690_s5 }
 0x8dd   :  { %v848_v23 = vpop.xlane.xlu1 %847 }
 0x8de   :  { %v850_v24 = vsub.f32 %v842_v18, %v848_v23 }
 0x8df   :  { %v845_v25 = vpop.xlane.xlu0 %844 }
 0x8e0   :  { %v853_v27 = vmul.f32 1.442695, %v850_v24  ;;  %v849_v28 = vsub.f32 %v841_v20, %v845_v25 }
 0x8e1   :  { %v866_v36 = vpop.permute.xlu1 %865 }
 0x8e2   :  { %3768 = vpow2.f32 %v853_v27  ;;  %v851_v29 = vmul.f32 1.442695, %v849_v28 }
 0x8e4   :  { %3770 = vpow2.f32 %v851_v29 }
 0x8e5   :  { %v960_v41 = vpop.permute.xlu1 %959 }
 0x8e9   :  { %v958_v47 = vpop.permute.xlu1 %957 }
 0x8ed   :  { %v956_v48 = vpop.permute.xlu1 %955 }
 0x8ef   :  { %v3769_v30 = vpop.eup %3768 }
 0x8f0   :  { %v858_v31 = vsel %vm434_vm5, %v3769_v30, 0.0 }
 0x8f1   :  { %v3771_v32 = vpop.eup %3770  ;;  %859 = vadd.xlane.f32.xlu0 %v858_v31 }
 0x8f2   :  { %v855_v33 = vsel %vm430_vm6, %v3771_v32, 0.0 }
 0x8f5   :  { %856 = vadd.xlane.f32.xlu0 %v855_v33 }
 0x90b   :  { %867 = vrot.lane.b32.xlu0 %v4114_v0, %s4698_s4  ;;  %s4700_s4 = smov 24  }
 0x90f   :  { %953 = vrot.lane.b32.xlu0 %v4108_v61, %s4690_s5  ;;  %s4692_s5 = smov 16  }
 0x97a   :  { %v860_v34 = vpop.xlane.xlu0 %859 }
 0x97b   :  { %3772 = vrcp.f32 %v860_v34 }
 0x97e   :  { %v857_v35 = vpop.xlane.xlu0 %856 }
 0x97f   :  { %3774 = vrcp.f32 %v857_v35 }
 0x982   :  { %v868_v37 = vpop.permute.xlu0 %867 }
 0x983   :  { %3470 = vmatprep.subr.msk.mxu1 %vm465_vm7, %v868_v37 }
 0x984   :  { %3471 = vmatpush3.msk.msra.mxu1 %vm465_vm7, %v868_v37 }
 0x985   :  { %3472 = vmatprep.subr.mxu1 %v866_v36 }
 0x986   :  { %3473 = vmatpush3.msra.mxu1 %v866_v36  ;;  %v954_v46 = vpop.permute.xlu0 %953 }
 0x987   :  { %3477 = vmatprep.subr.msk.mxu1 %vm342_vm4, %v960_v41 }
 0x988   :  { %v3773_v42 = vpop.eup %3772 }
 0x989   :  { %v864_v45 = vmul.f32 %v3773_v42, %v3769_v30 }
 0x98c   :  { %v3775_v43 = vpop.eup %3774 }
 0x98d   :  { %v863_v44 = vmul.f32 %v3775_v43, %v3771_v32 }
 0x98f   :  { %3474 = vmatprep.mubr.msk.f32.mxu1 %vm430_vm6, %v863_v44 }
 0x990   :  { %3475 = vmatmul.mubr.msk.f32.vlgmr.msra.gmra.mxu1 %vm430_vm6, %v864_v45 }
 0x991   :  { %3478 = vmatpush3.xpose.msk.msra.mxu1 %vm342_vm4, %v960_v41  ;;  %3481 = vmatprep.mubr.msk.f32.mxu1 %vm342_vm4, %v954_v46 }
 0x992   :  { %3479 = vmatprep.subr.msk.mxu1 %vm342_vm4, %v958_v47 }
 0x995   :  { %3480 = vmatpush3.xpose.msk.msra.mxu1 %vm342_vm4, %v958_v47 }
 0x996   :  { %3491 = vmatprep.subr.bf16.mxu1 %v3893_v40 }
 0x998   :  { %3482 = vmatmul.mubr.msk.f32.vlgmr.msra.gmra.mxu1 %vm342_vm4, %v956_v48 }
 0x999   :  { %3495 = vmatprep.mubr.msk.bf16.mxu1 %vm3894_vm3, %v3893_v40 }
 0xa50   :  { %v3476_v49 = vpop.f32.mrf.mxu1 }
 0xa52   :  { %v944_v50 = vpop.f32.mrf.mxu1 }
 0xa53   :  { %v3681_v59 = vpack.i.bf16 %v3476_v49, %v944_v50 }
 0xa58   :  { %v3483_v51 = vpop.f32.mrf.mxu1 }
 0xa59   :  { %v1045_v52 = vmul.f32 0.35355338, %v3483_v51 }
 0xa5a   :  { %v1035_v53 = vpop.f32.mrf.mxu1 }
 0xa5b   :  { %v1044_v54 = vmul.f32 0.35355338, %v1035_v53  ;;  %v1047_v55 = vadd.f32 %v1045_v52, %v4127_v5 }
 0xa5d   :  { %v1051_v56 = vsel %vm434_vm5, %v1047_v55, -inf  ;;  %v1046_v57 = vadd.f32 %v1044_v54, %v4132_v8 }
 0xa5e   :  { %1052 = vmax.xlane.f32.xlu1 %v1051_v56 }
 0xa5f   :  { %v1048_v58 = vsel %vm430_vm6, %v1046_v57, -inf }
 0xa60   :  { %1049 = vmax.xlane.f32.xlu0 %v1048_v58 }
 0xa6f   :  { %1070 = vrot.lane.b32.xlu1 %v4108_v61, %s4694_s23 }
 0xa73   :  { %3677 = vrot.lane.b32.xlu1 %v3676_v13, %s4693_s1 }
 0xa77   :  { %3682 = vrot.lane.b32.xlu1 %v3681_v59, %s4692_s5  ;;  %v3724_v59 = vld [vmem:[%s4674_s12 + $0x8] sm:$0xff]   ;;  %s4723_s5 = smov 72  }
 0xae7   :  { %v1053_v60 = vpop.xlane.xlu1 %1052 }
 0xae8   :  { %v1055_v62 = vsub.f32 %v1047_v55, %v1053_v60  ;;  %v3725_v60 = vld [vmem:[%s4674_s12] sm:$0xff]  }
 0xae9   :  { %v1050_v63 = vpop.xlane.xlu0 %1049 }
 0xaea   :  { %v1058_v1 = vmul.f32 1.442695, %v1055_v62  ;;  %v1054_v2 = vsub.f32 %v1046_v57, %v1050_v63 }
 0xaeb   :  { %v1071_v12 = vpop.permute.xlu1 %1070 }
 0xaec   :  { %3776 = vpow2.f32 %v1058_v1  ;;  %v1056_v3 = vmul.f32 1.442695, %v1054_v2 }
 0xaee   :  { %3778 = vpow2.f32 %v1056_v3 }
 0xaef   :  { %v3678_v22 = vpop.permute.xlu1 %3677 }
 0xaf0   :  { %v3680_v24 = vunpack.i.h.bf16 %v3678_v22  ;;  %v3679_v25 = vunpack.i.l.bf16 %v3678_v22  ;;  %v3731_v22 = vld [vmem:[%s4676_s14 + $0x10] sm:$0xff]  }
 0xaf2   :  { %v1183_v30 = vsel %vm342_vm4, %v4162_v38, %v3680_v24  ;;  %v1182_v31 = vsel %vm342_vm4, %v4164_v39, %v3679_v25  ;;  %v3199_v39 = vld [vmem:[%s4671_s9] ss:$0 sm:$0xff] }
 0xaf3   :  { %v3683_v23 = vpop.permute.xlu1 %3682  ;;  %v3733_v24 = vld [vmem:[%s4676_s14] sm:$0xff]  }
 0xaf4   :  { %v3685_v27 = vunpack.i.h.bf16 %v3683_v23  ;;  %v3684_v28 = vunpack.i.l.bf16 %v3683_v23  ;;  %v3732_v23 = vld [vmem:[%s4676_s14 + $0x8] sm:$0xff]   ;;  %v3202_v25 = vld [vmem:[%s4675_s13] ss:$0 sm:$0xff] }
 0xaf6   :  { %v1185_v34 = vsel %vm1184_vm8, %v1182_v31, %v3684_v28  ;;  %v1186_v35 = vsel %vm1184_vm8, %v1183_v30, %v3685_v27 }
 0xaf9   :  { %v3777_v4 = vpop.eup %3776 }
 0xafa   :  { %v1063_v61 = vsel %vm434_vm5, %v3777_v4, 0.0 }
 0xafb   :  { %v3779_v6 = vpop.eup %3778  ;;  %1064 = vadd.xlane.f32.xlu0 %v1063_v61 }
 0xafc   :  { %v1060_v7 = vsel %vm430_vm6, %v3779_v6, 0.0 }
 0xaff   :  { %1061 = vadd.xlane.f32.xlu0 %v1060_v7  ;;  %v3200_v7 = vld [vmem:[%s4672_s10] ss:$0 sm:$0xff] }
 0xb15   :  { %1072 = vrot.lane.b32.xlu0 %v4114_v0, %s4694_s23  ;;  %v3722_v0 = vld [vmem:[%s4670_s8 + $0x8] sm:$0xff]   ;;  %s4727_s23 = smov 16  }
 0xb16   :  { %3492 = vmatpush3.bf16.msra.mxu1 %v3722_v0  ;;  %v3726_v0 = vld [vmem:[%s4676_s14 + $0x38] sm:$0xff]  }
 0xb17   :  { %3493 = vmatprep.subr.bf16.mxu1 %v3893_v40 }
 0xb1a   :  { %3494 = vmatpush3.bf16.msra.mxu1 %v3723_v17  ;;  %v3727_v17 = vld [vmem:[%s4676_s14 + $0x30] sm:$0xff]  }
 0xb1b   :  { %3507 = vmatprep.subr.bf16.mxu1 %v3893_v40 }
 0xb84   :  { %v1065_v9 = vpop.xlane.xlu0 %1064 }
 0xb85   :  { %3780 = vrcp.f32 %v1065_v9 }
 0xb88   :  { %v1062_v10 = vpop.xlane.xlu0 %1061 }
 0xb89   :  { %3782 = vrcp.f32 %v1062_v10 }
 0xb8c   :  { %v1073_v11 = vpop.permute.xlu0 %1072 }
 0xb8d   :  { %3484 = vmatprep.subr.msk.mxu0 %vm465_vm7, %v1073_v11 }
 0xb8e   :  { %3485 = vmatpush3.msk.msra.mxu0 %vm465_vm7, %v1073_v11 }
 0xb8f   :  { %3486 = vmatprep.subr.mxu0 %v1071_v12 }
 0xb90   :  { %3487 = vmatpush3.msra.mxu0 %v1071_v12  ;;  %v3201_v12 = vld [vmem:[%s4673_s11] ss:$0 sm:$0xff] }
 0xb91   :  { %3499 = vmatprep.subr.bf16.mxu0 %v3893_v40 }
 0xb92   :  { %v3781_v13 = vpop.eup %3780 }
 0xb93   :  { %v1069_v16 = vmul.f32 %v3781_v13, %v3777_v4 }
 0xb96   :  { %v3783_v14 = vpop.eup %3782 }
 0xb97   :  { %v1068_v15 = vmul.f32 %v3783_v14, %v3779_v6 }
 0xb99   :  { %3488 = vmatprep.mubr.msk.f32.mxu0 %vm430_vm6, %v1068_v15 }
 0xb9a   :  { %3489 = vmatmul.mubr.msk.f32.vlgmr.msra.gmra.mxu0 %vm430_vm6, %v1069_v16 }
 0xb9b   :  { %3503 = vmatprep.mubr.msk.bf16.mxu0 %vm3894_vm3, %v3893_v40  ;;  %3500 = vmatpush3.bf16.msra.mxu0 %v3724_v59 }
 0xb9c   :  { %3501 = vmatprep.subr.bf16.mxu0 %v3893_v40 }
 0xb9f   :  { %3502 = vmatpush3.bf16.msra.mxu0 %v3725_v60 }
 0xba0   :  { %3527 = vmatprep.subr.bf16.mxu0 %v3893_v40 }
 0xc5a   :  { %v3490_v18 = vpop.f32.mrf.mxu0 }
 0xc5c   :  { %v1149_v19 = vpop.f32.mrf.mxu0 }
 0xc5d   :  { %v3686_v20 = vpack.i.bf16 %v3490_v18, %v1149_v19  ;;  %v3728_v18 = vld [vmem:[%s4676_s14 + $0x28] sm:$0xff]   ;;  %v3729_v19 = vld [vmem:[%s4676_s14 + $0x20] sm:$0xff]  }
 0xc5f   :  { %3687 = vrot.lane.b32.xlu0 %v3686_v20, %s4700_s4  ;;  %v3730_v20 = vld [vmem:[%s4676_s14 + $0x18] sm:$0xff]   ;;  %s4726_s4 = smov 8  }
 0xcd1   :  { %v3688_v29 = vpop.permute.xlu0 %3687 }
 0xcd2   :  { %v3690_v32 = vunpack.i.h.bf16 %v3688_v29  ;;  %v3689_v33 = vunpack.i.l.bf16 %v3688_v29 }
 0xcd4   :  { %v1189_v36 = vsel %vm1187_vm9, %v1186_v35, %v3690_v32  ;;  %v1188_v37 = vsel %vm1187_vm9, %v1185_v34, %v3689_v33 }
 0xcd5   :  { %v1194_v41 = vpack.c.bf16 %v1189_v36, %v1188_v37 }
 0xcd7   :  { %3496 = vmatmul.mubr.msk.bf16.vlgmr.msra.gmra.mxu1 %vm223_vm1, %v1194_v41 }
 0xcd8   :  { %3523 = vmatprep.mubr.msk.bf16.mxu1 %vm3894_vm3, %v3893_v40  ;;  %3508 = vmatpush3.bf16.msra.mxu1 %v3726_v0 }
 0xcd9   :  { %3509 = vmatprep.subr.bf16.mxu1 %v3893_v40 }
 0xcdc   :  { %3510 = vmatpush3.bf16.msra.mxu1 %v3727_v17 }
 0xcdd   :  { %3511 = vmatprep.subr.bf16.mxu1 %v3893_v40 }
 0xce0   :  { %3512 = vmatpush3.bf16.msra.mxu1 %v3728_v18 }
 0xce1   :  { %3513 = vmatprep.subr.bf16.mxu1 %v3893_v40 }
 0xce4   :  { %3514 = vmatpush3.bf16.msra.mxu1 %v3729_v19 }
 0xce5   :  { %3515 = vmatprep.subr.bf16.mxu1 %v3893_v40 }
 0xce8   :  { %3516 = vmatpush3.bf16.msra.mxu1 %v3730_v20  ;;  %v3217_v20 = vld [vmem:[%s4716_s27 + $0x1] ss:$0 sm:$0xff]  ;;  %s4720_s27 = smov 112  }
 0xce9   :  { %3517 = vmatprep.subr.bf16.mxu1 %v3893_v40 }
 0xcec   :  { %3518 = vmatpush3.bf16.msra.mxu1 %v3731_v22 }
 0xced   :  { %3519 = vmatprep.subr.bf16.mxu1 %v3893_v40 }
 0xcf0   :  { %3520 = vmatpush3.bf16.msra.mxu1 %v3732_v23 }
 0xcf1   :  { %3521 = vmatprep.subr.bf16.mxu1 %v3893_v40 }
 0xcf4   :  { %3522 = vmatpush3.bf16.msra.mxu1 %v3733_v24 }
 0xd97   :  { %v1244_v38 = vpop.f32.mrf.mxu1 }
 0xd98   :  { %v1251_v42 = vadd.f32 %v1244_v38, %v4073_v21 }
 0xd99   :  { %v3497_v43 = vpop.f32.mrf.mxu1 }
 0xd9a   :  { %v4277_v44 = vadd.f32 %v3199_v39, %v1251_v42 }
 0xd9b   :  { %v1247_v45 = vpop.f32.mrf.mxu1 }
 0xd9c   :  { %v1252_v46 = vadd.f32 %v1247_v45, %v4080_v26  ;;  %v1264_v47 = vsel %vm223_vm1, %v4277_v44, 0.0 }
 0xd9d   :  { %1265 = vadd.xlane.f32.xlu1 %v1264_v47  ;;  %v3498_v48 = vpop.f32.mrf.mxu1 }
 0xd9e   :  { %v4282_v49 = vadd.f32 %v3199_v39, %v1252_v46 }
 0xda0   :  { %v1267_v50 = vsel %vm227_vm2, %v4282_v49, 0.0 }
 0xda1   :  { %1268 = vadd.xlane.f32.xlu0 %v1267_v50 }
 0xe26   :  { %v1266_v51 = vpop.xlane.xlu1 %1265 }
 0xe27   :  { %v1270_v52 = vmul.f32 0.03125, %v1266_v51 }
 0xe29   :  { %v1272_v21 = vsub.f32 %v4277_v44, %v1270_v52 }
 0xe2a   :  { %v1269_v53 = vpop.xlane.xlu0 %1268 }
 0xe2b   :  { %v1271_v54 = vmul.f32 0.03125, %v1269_v53  ;;  %v1274_v55 = vmul.f32 %v1272_v21, %v1272_v21 }
 0xe2d   :  { %v1273_v26 = vsub.f32 %v4282_v49, %v1271_v54  ;;  %v1276_v56 = vsel %vm223_vm1, %v1274_v55, 0.0  ;;  %v3214_v55 = vld [vmem:[%s4677_s15] ss:$0 sm:$0xff] }
 0xe2e   :  { %1277 = vadd.xlane.f32.xlu0 %v1276_v56 }
 0xe2f   :  { %v1275_v57 = vmul.f32 %v1273_v26, %v1273_v26 }
 0xe31   :  { %v1279_v58 = vsel %vm227_vm2, %v1275_v57, 0.0 }
 0xe32   :  { %1280 = vadd.xlane.f32.xlu0 %v1279_v58 }
 0xeb7   :  { %v1278_v62 = vpop.xlane.xlu0 %1277 }
 0xeb8   :  { %v1282_v63 = vmul.f32 0.03125, %v1278_v62 }
 0xeba   :  { %v1284_v1 = vadd.f32 1e-12, %v1282_v63 }
 0xebb   :  { %v1281_v2 = vpop.xlane.xlu0 %1280 }
 0xebc   :  { %3784 = vrsqrt.f32 %v1284_v1  ;;  %v1283_v3 = vmul.f32 0.03125, %v1281_v2 }
 0xebe   :  { %v1285_v4 = vadd.f32 1e-12, %v1283_v3 }
 0xec0   :  { %3786 = vrsqrt.f32 %v1285_v4 }
 0xec9   :  { %v3785_v61 = vpop.eup %3784 }
 0xeca   :  { %v1288_v6 = vmul.f32 %v3785_v61, %v1272_v21 }
 0xecc   :  { %v1296_v11 = vmul.f32 %v3200_v7, %v1288_v6 }
 0xecd   :  { %v3787_v9 = vpop.eup %3786 }
 0xece   :  { %v1289_v10 = vmul.f32 %v3787_v9, %v1273_v26  ;;  %v1304_v14 = vadd.f32 %v3201_v12, %v1296_v11  ;;  %v3734_v11 = vld [vmem:[%s4668_s6 + $0x18] sm:$0xff]  }
 0xed0   :  { %v1297_v13 = vmul.f32 %v3200_v7, %v1289_v10 }
 0xed2   :  { %v1305_v15 = vadd.f32 %v3201_v12, %v1297_v13  ;;  %v3735_v12 = vld [vmem:[%s4668_s6 + $0x10] sm:$0xff]  }
 0xed4   :  { %v1310_v16 = vpack.c.bf16 %v1305_v15, %v1304_v14 }
 0xed6   :  { %3504 = vmatmul.mubr.msk.bf16.vlgmr.msra.gmra.mxu0 %vm223_vm1, %v1310_v16 }
 0xed7   :  { %3531 = vmatprep.mubr.msk.bf16.mxu0 %vm3894_vm3, %v3893_v40  ;;  %3528 = vmatpush3.bf16.msra.mxu0 %v3734_v11 }
 0xed8   :  { %3529 = vmatprep.subr.bf16.mxu0 %v3893_v40 }
 0xedb   :  { %3530 = vmatpush3.bf16.msra.mxu0 %v3735_v12 }
 0xf96   :  { %v1367_v27 = vpop.f32.mrf.mxu0 }
 0xf97   :  { %v1368_v28 = vadd.f32 %v3202_v25, %v1367_v27 }
 0xf98   :  { %v3505_v29 = vpop.f32.mrf.mxu0 }
 0xf99   :  { %v1374_v30 = vmul.f32 %v1368_v28, %v1368_v28 }
 0xf9a   :  { %v1370_v31 = vpop.f32.mrf.mxu0 }
 0xf9b   :  { %v1376_v32 = vmul.f32 %v1374_v30, %v1368_v28  ;;  %v1371_v33 = vadd.f32 %v3202_v25, %v1370_v31  ;;  %v3218_v25 = vld [vmem:[%s4717_s29 + $0x1] ss:$0 sm:$0xff] }
 0xf9c   :  { %v3506_v34 = vpop.f32.mrf.mxu0  ;;  %v3224_v31 = vld [vmem:[%s4669_s7 + $0x1] ss:$0 sm:$0xff]  ;;  %s4719_s7 = smov 120  }
 0xf9d   :  { %v1378_v35 = vmul.f32 0.044715, %v1376_v32  ;;  %v1375_v36 = vmul.f32 %v1371_v33, %v1371_v33 }
 0xf9f   :  { %v1380_v37 = vadd.f32 %v1378_v35, %v1368_v28  ;;  %v1377_v41 = vmul.f32 %v1375_v36, %v1371_v33 }
 0xfa1   :  { %v1382_v38 = vmul.f32 0.7978846, %v1380_v37  ;;  %v1379_v39 = vmul.f32 0.044715, %v1377_v41 }
 0xfa3   :  { %3788 = vtanh.f32 %v1382_v38  ;;  %v1381_v42 = vadd.f32 %v1379_v39, %v1371_v33 }
 0xfa5   :  { %v1383_v43 = vmul.f32 0.7978846, %v1381_v42 }
 0xfa7   :  { %3790 = vtanh.f32 %v1383_v43 }
 0xfb0   :  { %v3789_v45 = vpop.eup %3788 }
 0xfb1   :  { %v1386_v46 = vadd.f32 1.0, %v3789_v45 }
 0xfb3   :  { %v1388_v48 = vmul.f32 0.5, %v1386_v46 }
 0xfb4   :  { %v3791_v47 = vpop.eup %3790 }
 0xfb5   :  { %v1387_v50 = vadd.f32 1.0, %v3791_v47  ;;  %v1390_v52 = vmul.f32 %v1388_v48, %v1368_v28 }
 0xfb7   :  { %v1389_v51 = vmul.f32 0.5, %v1387_v50 }
 0xfb9   :  { %v1391_v21 = vmul.f32 %v1389_v51, %v1371_v33 }
 0xfbb   :  { %v1408_v53 = vpack.c.bf16 %v1391_v21, %v1390_v52 }
 0xfbd   :  { %3524 = vmatmul.mubr.bf16.vlgmr.msra.gmra.mxu1 %v1408_v53 }
0x107d   :  { %v1491_v54 = vpop.f32.mrf.mxu1 }
0x107e   :  { %v1498_v26 = vadd.f32 %v1491_v54, %v4277_v44 }
0x107f   :  { %v3525_v56 = vpop.f32.mrf.mxu1 }
0x1080   :  { %v4345_v57 = vadd.f32 %v3214_v55, %v1498_v26 }
0x1081   :  { %v1494_v58 = vpop.f32.mrf.mxu1 }
0x1082   :  { %v1499_v59 = vadd.f32 %v1494_v58, %v4282_v49  ;;  %v1513_v60 = vsel %vm223_vm1, %v4345_v57, 0.0 }
0x1083   :  { %1514 = vadd.xlane.f32.xlu1 %v1513_v60  ;;  %v3526_v62 = vpop.f32.mrf.mxu1 }
0x1084   :  { %v4350_v63 = vadd.f32 %v3214_v55, %v1499_v59 }
0x1086   :  { %v1516_v1 = vsel %vm227_vm2, %v4350_v63, 0.0 }
0x1087   :  { %1517 = vadd.xlane.f32.xlu0 %v1516_v1 }
0x110c   :  { %v1515_v2 = vpop.xlane.xlu1 %1514 }
0x110d   :  { %v1519_v3 = vmul.f32 0.03125, %v1515_v2 }
0x110f   :  { %v1521_v44 = vsub.f32 %v4345_v57, %v1519_v3 }
0x1110   :  { %v1518_v4 = vpop.xlane.xlu0 %1517 }
0x1111   :  { %v1520_v61 = vmul.f32 0.03125, %v1518_v4  ;;  %v1523_v6 = vmul.f32 %v1521_v44, %v1521_v44 }
0x1113   :  { %v1522_v49 = vsub.f32 %v4350_v63, %v1520_v61  ;;  %v1525_v7 = vsel %vm223_vm1, %v1523_v6, 0.0 }
0x1114   :  { %1526 = vadd.xlane.f32.xlu1 %v1525_v7 }
0x1115   :  { %v1524_v9 = vmul.f32 %v1522_v49, %v1522_v49 }
0x1117   :  { %v1528_v10 = vsel %vm227_vm2, %v1524_v9, 0.0 }
0x1118   :  { %1529 = vadd.xlane.f32.xlu0 %v1528_v10 }
0x119d   :  { %v1527_v13 = vpop.xlane.xlu1 %1526 }
0x119e   :  { %v1531_v14 = vmul.f32 0.03125, %v1527_v13 }
0x11a0   :  { %v1533_v15 = vadd.f32 1e-12, %v1531_v14 }
0x11a1   :  { %v1530_v16 = vpop.xlane.xlu0 %1529 }
0x11a2   :  { %3792 = vrsqrt.f32 %v1533_v15  ;;  %v1532_v0 = vmul.f32 0.03125, %v1530_v16 }
0x11a4   :  { %v1534_v17 = vadd.f32 1e-12, %v1532_v0 }
0x11a6   :  { %3794 = vrsqrt.f32 %v1534_v17 }
0x11af   :  { %v3793_v18 = vpop.eup %3792 }
0x11b0   :  { %v1537_v19 = vmul.f32 %v3793_v18, %v1521_v44 }
0x11b2   :  { %v1545_v24 = vmul.f32 %v3217_v20, %v1537_v19 }
0x11b3   :  { %v3795_v22 = vpop.eup %3794 }
0x11b4   :  { %v1538_v23 = vmul.f32 %v3795_v22, %v1522_v49  ;;  %v1553_v28 = vadd.f32 %v3218_v25, %v1545_v24 }
0x11b6   :  { %v1546_v27 = vmul.f32 %v3217_v20, %v1538_v23  ;;  %v4440_v20 = vld [vmem:[%s4718_s22 + $0x8] sm:$0x3] }
0x11b8   :  { %v1554_v29 = vadd.f32 %v3218_v25, %v1546_v27  ;;  %v4447_v25 = vld [vmem:[%s4718_s22] sm:$0xff]  ;;  %s4721_s22 = smov 56  }
0x11ba   :  { %v1560_v30 = vpack.c.bf16 %v1554_v29, %v1553_v28 }
0x11bc   :  { %3532 = vmatmul.mubr.msk.bf16.vlgmr.msra.gmra.mxu0 %vm223_vm1, %v1560_v30 }
0x127c   :  { %v1618_v32 = vpop.f32.mrf.mxu0 }
0x127d   :  { %v4375_v33 = vadd.f32 %v3224_v31, %v1618_v32 }
0x127e   :  { %v3533_v34 = vpop.f32.mrf.mxu0 }
0x127f   :  { %1627 = vrot.lane.b32.xlu0 %v4375_v33, %s3895_s30  ;;  %3539 = vmatprep.mubr.msk.f32.mxu0 %vm342_vm4, %v4375_v33 }
0x1280   :  { %v1621_v35 = vpop.f32.mrf.mxu0 }
0x1281   :  { %v4381_v36 = vadd.f32 %v3224_v31, %v1621_v35 }
0x1282   :  { %v3534_v37 = vpop.f32.mrf.mxu0 }
0x1283   :  { %1629 = vrot.lane.b32.xlu1 %v4381_v36, %s3895_s30 }
0x12f1   :  { %v1628_v38 = vpop.permute.xlu0 %1627 }
0x12f5   :  { %v1630_v41 = vpop.permute.xlu1 %1629 }
0x12f6   :  { %3535 = vmatprep.subr.msk.mxu0 %vm342_vm4, %v1630_v41 }
0x12f7   :  { %3536 = vmatpush3.xpose.msk.msra.mxu0 %vm342_vm4, %v1630_v41 }
0x12f8   :  { %3537 = vmatprep.subr.msk.mxu0 %vm342_vm4, %v1628_v38 }
0x12fb   :  { %3538 = vmatpush3.xpose.msk.msra.mxu0 %vm342_vm4, %v1628_v38 }
0x12fe   :  { %3540 = vmatmul.mubr.msk.f32.vlgmr.msra.gmra.mxu0 %vm342_vm4, %v4381_v36 }
0x13be   :  { %v3541_v39 = vpop.f32.mrf.mxu0 }
0x13bf   :  { %v1715_v42 = vmul.f32 0.35355338, %v3541_v39 }
0x13c0   :  { %v1705_v43 = vpop.f32.mrf.mxu0 }
0x13c1   :  { %v1714_v45 = vmul.f32 0.35355338, %v1705_v43  ;;  %v1717_v46 = vadd.f32 %v1715_v42, %v4127_v5 }
0x13c3   :  { %v1721_v47 = vsel %vm434_vm5, %v1717_v46, -inf  ;;  %v1716_v48 = vadd.f32 %v1714_v45, %v4132_v8 }
0x13c4   :  { %1722 = vmax.xlane.f32.xlu0 %v1721_v47 }
0x13c5   :  { %v1718_v50 = vsel %vm430_vm6, %v1716_v48, -inf }
0x13c6   :  { %1719 = vmax.xlane.f32.xlu1 %v1718_v50 }
0x13d7   :  { %1742 = vrot.lane.b32.xlu1 %v4381_v36, %s3896_s24 }
0x13da   :  { %1740 = vrot.lane.b32.xlu0 %v4375_v33, %s3896_s24 }
0x13db   :  { %1834 = vrot.lane.b32.xlu1 %v4381_v36, %s3897_s2 }
0x13df   :  { %1832 = vrot.lane.b32.xlu1 %v4375_v33, %s3897_s2 }
0x13e3   :  { %2039 = vrot.lane.b32.xlu1 %v4381_v36, %s3900_s28 }
0x144d   :  { %v1723_v5 = vpop.xlane.xlu0 %1722 }
0x144e   :  { %v1725_v8 = vsub.f32 %v1717_v46, %v1723_v5 }
0x144f   :  { %v1720_v51 = vpop.xlane.xlu1 %1719 }
0x1450   :  { %v1728_v52 = vmul.f32 1.442695, %v1725_v8  ;;  %v1724_v21 = vsub.f32 %v1716_v48, %v1720_v51 }
0x1451   :  { %v1741_v55 = vpop.permute.xlu0 %1740 }
0x1452   :  { %3796 = vpow2.f32 %v1728_v52  ;;  %v1726_v53 = vmul.f32 1.442695, %v1724_v21 }
0x1453   :  { %v1743_v54 = vpop.permute.xlu1 %1742 }
0x1454   :  { %3798 = vpow2.f32 %v1726_v53  ;;  %3542 = vmatprep.subr.msk.mxu0 %vm465_vm7, %v1743_v54 }
0x1455   :  { %3543 = vmatpush3.msk.msra.mxu0 %vm465_vm7, %v1743_v54 }
0x1456   :  { %3544 = vmatprep.subr.mxu0 %v1741_v55 }
0x1457   :  { %3545 = vmatpush3.msra.mxu0 %v1741_v55  ;;  %v1835_v26 = vpop.permute.xlu1 %1834 }
0x1458   :  { %3549 = vmatprep.subr.msk.mxu0 %vm342_vm4, %v1835_v26 }
0x145b   :  { %v1833_v56 = vpop.permute.xlu1 %1832 }
0x145f   :  { %v3797_v58 = vpop.eup %3796  ;;  %v2040_v59 = vpop.permute.xlu1 %2039 }
0x1460   :  { %3563 = vmatprep.subr.msk.mxu1 %vm342_vm4, %v2040_v59  ;;  %v1733_v60 = vsel %vm434_vm5, %v3797_v58, 0.0 }
0x1461   :  { %v3799_v62 = vpop.eup %3798  ;;  %1734 = vadd.xlane.f32.xlu0 %v1733_v60  ;;  %3564 = vmatpush3.xpose.msk.msra.mxu1 %vm342_vm4, %v2040_v59 }
0x1462   :  { %v1730_v1 = vsel %vm430_vm6, %v3799_v62, 0.0 }
0x1463   :  { %1731 = vadd.xlane.f32.xlu1 %v1730_v1 }
0x1474   :  { %1830 = vrot.lane.b32.xlu1 %v4381_v36, %s4719_s7 }
0x1477   :  { %1828 = vrot.lane.b32.xlu0 %v4375_v33, %s4719_s7  ;;  %s4728_s7 = smov 24  }
0x1478   :  { %2033 = vrot.lane.b32.xlu1 %v4375_v33, %s4720_s27 }
0x147b   :  { %2037 = vrot.lane.b32.xlu0 %v4375_v33, %s3900_s28  ;;  %s4722_s28 = smov 48  }
0x147f   :  { %2035 = vrot.lane.b32.xlu0 %v4381_v36, %s4720_s27 }
0x14ea   :  { %v1735_v2 = vpop.xlane.xlu0 %1734 }
0x14eb   :  { %3800 = vrcp.f32 %v1735_v2 }
0x14ec   :  { %v1732_v3 = vpop.xlane.xlu1 %1731 }
0x14ed   :  { %3802 = vrcp.f32 %v1732_v3 }
0x14ee   :  { %v1829_v44 = vpop.permute.xlu0 %1828 }
0x14f0   :  { %v1831_v4 = vpop.permute.xlu1 %1830 }
0x14f2   :  { %v2038_v61 = vpop.permute.xlu0 %2037 }
0x14f3   :  { %3565 = vmatprep.subr.msk.mxu1 %vm342_vm4, %v2038_v61 }
0x14f4   :  { %3566 = vmatpush3.xpose.msk.msra.mxu1 %vm342_vm4, %v2038_v61  ;;  %v2034_v6 = vpop.permute.xlu1 %2033 }
0x14f5   :  { %3567 = vmatprep.mubr.msk.f32.mxu1 %vm342_vm4, %v2034_v6 }
0x14f6   :  { %v2036_v49 = vpop.permute.xlu0 %2035 }
0x14f7   :  { %3568 = vmatmul.mubr.msk.f32.vlgmr.msra.gmra.mxu1 %vm342_vm4, %v2036_v49 }
0x14f8   :  { %v3801_v7 = vpop.eup %3800 }
0x14f9   :  { %v1739_v11 = vmul.f32 %v3801_v7, %v3797_v58 }
0x14fa   :  { %v3803_v9 = vpop.eup %3802 }
0x14fb   :  { %v1738_v10 = vmul.f32 %v3803_v9, %v3799_v62 }
0x14fd   :  { %3546 = vmatprep.mubr.msk.f32.mxu0 %vm430_vm6, %v1738_v10 }
0x14fe   :  { %3547 = vmatmul.mubr.msk.f32.vlgmr.msra.gmra.mxu0 %vm430_vm6, %v1739_v11 }
0x14ff   :  { %3550 = vmatpush3.xpose.msk.msra.mxu0 %vm342_vm4, %v1835_v26  ;;  %3553 = vmatprep.mubr.msk.f32.mxu0 %vm342_vm4, %v1829_v44 }
0x1500   :  { %3551 = vmatprep.subr.msk.mxu0 %vm342_vm4, %v1833_v56 }
0x1503   :  { %3552 = vmatpush3.xpose.msk.msra.mxu0 %vm342_vm4, %v1833_v56 }
0x1506   :  { %3554 = vmatmul.mubr.msk.f32.vlgmr.msra.gmra.mxu0 %vm342_vm4, %v1831_v4 }
0x15b7   :  { %v3569_v12 = vpop.f32.mrf.mxu1 }
0x15b8   :  { %v2125_v23 = vmul.f32 0.35355338, %v3569_v12 }
0x15b9   :  { %v2115_v14 = vpop.f32.mrf.mxu1 }
0x15ba   :  { %v2124_v0 = vmul.f32 0.35355338, %v2115_v14  ;;  %v2127_v31 = vadd.f32 %v4440_v20, %v2125_v23 }
0x15bc   :  { %v2126_v28 = vadd.f32 %v4447_v25, %v2124_v0  ;;  %v2131_v32 = vsel %vm434_vm5, %v2127_v31, -inf }
0x15be   :  { %v4433_v13 = vpop.f32.mrf.mxu0  ;;  %v2128_v30 = vsel %vm430_vm6, %v2126_v28, -inf }
0x15c0   :  { %v4435_v15 = vpop.f32.mrf.mxu0 }
0x15c6   :  { %v3555_v16 = vpop.f32.mrf.mxu0 }
0x15c7   :  { %v1920_v17 = vmul.f32 0.35355338, %v3555_v16 }
0x15c8   :  { %v1910_v18 = vpop.f32.mrf.mxu0 }
0x15c9   :  { %v1919_v19 = vmul.f32 0.35355338, %v1910_v18  ;;  %v1922_v22 = vadd.f32 %v4440_v20, %v1920_v17 }
0x15cb   :  { %v1926_v24 = vsel %vm434_vm5, %v1922_v22, -inf  ;;  %v1921_v27 = vadd.f32 %v4447_v25, %v1919_v19 }
0x15cc   :  { %1927 = vmax.xlane.f32.xlu0 %v1926_v24 }
0x15cd   :  { %v1923_v29 = vsel %vm430_vm6, %v1921_v27, -inf }
0x15ce   :  { %1924 = vmax.xlane.f32.xlu1 %v1923_v29 }
0x15d0   :  { %2129 = vmax.xlane.f32.xlu0 %v2128_v30 }
0x15d4   :  { %2132 = vmax.xlane.f32.xlu0 %v2131_v32 }
0x1655   :  { %v1928_v34 = vpop.xlane.xlu0 %1927 }
0x1656   :  { %v1930_v41 = vsub.f32 %v1922_v22, %v1928_v34 }
0x1657   :  { %v1925_v51 = vpop.xlane.xlu1 %1924 }
0x1658   :  { %v1933_v43 = vmul.f32 1.442695, %v1930_v41  ;;  %v1929_v52 = vsub.f32 %v1921_v27, %v1925_v51 }
0x1659   :  { %v2130_v35 = vpop.xlane.xlu0 %2129 }
0x165a   :  { %v2134_v37 = vsub.f32 %v2126_v28, %v2130_v35  ;;  %v1931_v21 = vmul.f32 1.442695, %v1929_v52 }
0x165c   :  { %v2136_v38 = vmul.f32 1.442695, %v2134_v37 }
0x165d   :  { %v2133_v39 = vpop.xlane.xlu0 %2132 }
0x165e   :  { %3804 = vpow2.f32 %v2136_v38  ;;  %v2135_v42 = vsub.f32 %v2127_v31, %v2133_v39 }
0x1660   :  { %v2138_v45 = vmul.f32 1.442695, %v2135_v42 }
0x1662   :  { %3806 = vpow2.f32 %v2138_v45 }
0x1663   :  { %3808 = vpow2.f32 %v1933_v43 }
0x1664   :  { %3810 = vpow2.f32 %v1931_v21 }
0x166b   :  { %v3805_v46 = vpop.eup %3804 }
0x166c   :  { %v2140_v47 = vsel %vm430_vm6, %v3805_v46, 0.0 }
0x166d   :  { %2141 = vadd.xlane.f32.xlu1 %v2140_v47 }
0x166f   :  { %v3807_v48 = vpop.eup %3806 }
0x1670   :  { %v2143_v50 = vsel %vm434_vm5, %v3807_v48, 0.0  ;;  %v3809_v5 = vpop.eup %3808 }
0x1671   :  { %2144 = vadd.xlane.f32.xlu0 %v2143_v50  ;;  %v1938_v8 = vsel %vm434_vm5, %v3809_v5, 0.0  ;;  %v3811_v53 = vpop.eup %3810 }
0x1672   :  { %v1935_v54 = vsel %vm430_vm6, %v3811_v53, 0.0 }
0x1675   :  { %1939 = vadd.xlane.f32.xlu0 %v1938_v8  ;;  %v3737_v8 = vld [vmem:[%s4670_s8 + $0x10] sm:$0xff]  }
0x167e   :  { %1947 = vrot.lane.b32.xlu1 %v4381_v36, %s4721_s22 }
0x1682   :  { %2152 = vrot.lane.b32.xlu1 %v4381_v36, %s4722_s28 }
0x1686   :  { %2150 = vrot.lane.b32.xlu1 %v4375_v33, %s4722_s28 }
0x168b   :  { %1945 = vrot.lane.b32.xlu0 %v4375_v33, %s4721_s22 }
0x168f   :  { %2242 = vrot.lane.b32.xlu0 %v4375_v33, %s4723_s5 }
0x1693   :  { %2240 = vrot.lane.b32.xlu0 %v4381_v36, %s4724_s0 }
0x16aa   :  { %1936 = vadd.xlane.f32.xlu1 %v1935_v54 }
0x16bb   :  { %2244 = vrot.lane.b32.xlu1 %v4381_v36, %s4723_s5 }
0x16bf   :  { %2238 = vrot.lane.b32.xlu1 %v4375_v33, %s4724_s0 }
0x16f6   :  { %v2142_v55 = vpop.xlane.xlu1 %2141 }
0x16f7   :  { %3812 = vrcp.f32 %v2142_v55 }
0x16fa   :  { %v1948_v26 = vpop.permute.xlu1 %1947  ;;  %v2145_v56 = vpop.xlane.xlu0 %2144 }
0x16fb   :  { %3556 = vmatprep.subr.msk.mxu0 %vm465_vm7, %v1948_v26 }
0x16fc   :  { %3557 = vmatpush3.msk.msra.mxu0 %vm465_vm7, %v1948_v26 }
0x16fe   :  { %v1940_v58 = vpop.xlane.xlu0 %1939  ;;  %v2153_v60 = vpop.permute.xlu1 %2152 }
0x16ff   :  { %3814 = vrcp.f32 %v1940_v58 }
0x1702   :  { %v1946_v59 = vpop.permute.xlu0 %1945  ;;  %v2151_v62 = vpop.permute.xlu1 %2150 }
0x1703   :  { %3558 = vmatprep.subr.mxu0 %v1946_v59 }
0x1704   :  { %3559 = vmatpush3.msra.mxu0 %v1946_v59  ;;  %v3813_v2 = vpop.eup %3812 }
0x1705   :  { %3570 = vmatprep.subr.msk.mxu0 %vm465_vm7, %v2153_v60  ;;  %v2148_v7 = vmul.f32 %v3813_v2, %v3805_v46 }
0x1706   :  { %v2243_v11 = vpop.permute.xlu0 %2242 }
0x170a   :  { %v2241_v12 = vpop.permute.xlu0 %2240 }
0x170c   :  { %v3815_v3 = vpop.eup %3814 }
0x170d   :  { %v1944_v6 = vmul.f32 %v3815_v3, %v3809_v5 }
0x1733   :  { %v1937_v1 = vpop.xlane.xlu1 %1936 }
0x1734   :  { %3816 = vrcp.f32 %v1937_v1 }
0x1735   :  { %3818 = vrcp.f32 %v2145_v56 }
0x1737   :  { %v2245_v61 = vpop.permute.xlu1 %2244 }
0x173b   :  { %v2239_v10 = vpop.permute.xlu1 %2238 }
0x1741   :  { %v3817_v44 = vpop.eup %3816 }
0x1742   :  { %v1943_v4 = vmul.f32 %v3817_v44, %v3811_v53  ;;  %v3819_v49 = vpop.eup %3818 }
0x1743   :  { %v2149_v9 = vmul.f32 %v3819_v49, %v3807_v48 }
0x1744   :  { %3560 = vmatprep.mubr.msk.f32.mxu0 %vm430_vm6, %v1943_v4 }
0x1745   :  { %3561 = vmatmul.mubr.msk.f32.vlgmr.msra.gmra.mxu0 %vm430_vm6, %v1944_v6 }
0x1746   :  { %3571 = vmatpush3.msk.msra.mxu0 %vm465_vm7, %v2153_v60  ;;  %3574 = vmatprep.mubr.msk.f32.mxu0 %vm430_vm6, %v2148_v7 }
0x1747   :  { %3572 = vmatprep.subr.mxu0 %v2151_v62 }
0x1748   :  { %3573 = vmatpush3.msra.mxu0 %v2151_v62 }
0x1749   :  { %3577 = vmatprep.subr.msk.mxu0 %vm342_vm4, %v2245_v61  ;;  %3575 = vmatmul.mubr.msk.f32.vlgmr.msra.gmra.mxu0 %vm430_vm6, %v2149_v9 }
0x174a   :  { %3578 = vmatpush3.xpose.msk.msra.mxu0 %vm342_vm4, %v2245_v61  ;;  %3581 = vmatprep.mubr.msk.f32.mxu0 %vm342_vm4, %v2239_v10 }
0x174b   :  { %3579 = vmatprep.subr.msk.mxu0 %vm342_vm4, %v2243_v11 }
0x174e   :  { %3580 = vmatpush3.xpose.msk.msra.mxu0 %vm342_vm4, %v2243_v11 }
0x174f   :  { %3599 = vmatprep.subr.bf16.mxu0 %v3893_v40 }
0x1751   :  { %3582 = vmatmul.mubr.msk.f32.vlgmr.msra.gmra.mxu0 %vm342_vm4, %v2241_v12 }
0x1752   :  { %3603 = vmatprep.mubr.msk.bf16.mxu0 %vm3894_vm3, %v3893_v40 }
0x1805   :  { %v3562_v14 = vpop.f32.mrf.mxu0 }
0x1807   :  { %v2024_v16 = vpop.f32.mrf.mxu0 }
0x1808   :  { %v3691_v30 = vpack.i.bf16 %v3562_v14, %v2024_v16 }
0x1809   :  { %v3576_v0 = vpop.f32.mrf.mxu0 }
0x180b   :  { %v2229_v17 = vpop.f32.mrf.mxu0 }
0x180c   :  { %v3696_v31 = vpack.i.bf16 %v3576_v0, %v2229_v17 }
0x1811   :  { %v3583_v18 = vpop.f32.mrf.mxu0 }
0x1812   :  { %v2330_v19 = vmul.f32 0.35355338, %v3583_v18 }
0x1813   :  { %v2320_v22 = vpop.f32.mrf.mxu0 }
0x1814   :  { %v2329_v23 = vmul.f32 0.35355338, %v2320_v22  ;;  %v2332_v24 = vadd.f32 %v4440_v20, %v2330_v19 }
0x1816   :  { %v2336_v27 = vsel %vm434_vm5, %v2332_v24, -inf  ;;  %v2331_v28 = vadd.f32 %v4447_v25, %v2329_v23 }
0x1817   :  { %2337 = vmax.xlane.f32.xlu0 %v2336_v27 }
0x1818   :  { %v2333_v29 = vsel %vm430_vm6, %v2331_v28, -inf }
0x1819   :  { %2334 = vmax.xlane.f32.xlu1 %v2333_v29  ;;  %v3738_v29 = vld [vmem:[%s4674_s12 + $0x18] sm:$0xff]  }
0x181a   :  { %3600 = vmatpush3.bf16.msra.mxu0 %v3738_v29 }
0x181b   :  { %3601 = vmatprep.subr.bf16.mxu0 %v3893_v40 }
0x182a   :  { %2357 = vrot.lane.b32.xlu1 %v4381_v36, %s4725_s3 }
0x182e   :  { %3692 = vrot.lane.b32.xlu1 %v3691_v30, %s4726_s4  ;;  %v3739_v30 = vld [vmem:[%s4674_s12 + $0x10] sm:$0xff]  }
0x182f   :  { %3602 = vmatpush3.bf16.msra.mxu0 %v3739_v30  ;;  %v3303_v30 = vld [vmem:[%s4677_s15 + $0x1] ss:$0 sm:$0xff] }
0x1830   :  { %3627 = vmatprep.subr.mxu0 %v3893_v40 }
0x1832   :  { %3697 = vrot.lane.b32.xlu1 %v3696_v31, %s4727_s23 }
0x18a0   :  { %v2338_v32 = vpop.xlane.xlu0 %2337 }
0x18a1   :  { %v2340_v34 = vsub.f32 %v2332_v24, %v2338_v32 }
0x18a2   :  { %v2335_v20 = vpop.xlane.xlu1 %2334 }
0x18a3   :  { %v2343_v35 = vmul.f32 1.442695, %v2340_v34  ;;  %v2339_v37 = vsub.f32 %v2331_v28, %v2335_v20 }
0x18a5   :  { %3820 = vpow2.f32 %v2343_v35  ;;  %v2341_v25 = vmul.f32 1.442695, %v2339_v37 }
0x18a6   :  { %v2358_v41 = vpop.permute.xlu1 %2357 }
0x18a7   :  { %3822 = vpow2.f32 %v2341_v25  ;;  %3584 = vmatprep.subr.msk.mxu1 %vm465_vm7, %v2358_v41 }
0x18a8   :  { %3585 = vmatpush3.msk.msra.mxu1 %vm465_vm7, %v2358_v41 }
0x18aa   :  { %v3693_v53 = vpop.permute.xlu1 %3692 }
0x18ab   :  { %v3695_v55 = vunpack.i.h.bf16 %v3693_v53  ;;  %v3694_v26 = vunpack.i.l.bf16 %v3693_v53  ;;  %v3747_v53 = vld [vmem:[%s4676_s14 + $0x40] sm:$0xff]  }
0x18ad   :  { %v2468_v60 = vsel %vm342_vm4, %v4433_v13, %v3695_v55  ;;  %v2467_v62 = vsel %vm342_vm4, %v4435_v15, %v3694_v26  ;;  %v3264_v15 = vld [vmem:[%s4671_s9 + $0x1] ss:$0 sm:$0xff] }
0x18ae   :  { %v3698_v54 = vpop.permute.xlu1 %3697 }
0x18af   :  { %v3700_v56 = vunpack.i.h.bf16 %v3698_v54  ;;  %v3699_v58 = vunpack.i.l.bf16 %v3698_v54  ;;  %v3274_v54 = vld [vmem:[%s4675_s13 + $0x1] ss:$0 sm:$0xff] }
0x18b1   :  { %v2469_v3 = vsel %vm1184_vm8, %v2467_v62, %v3699_v58  ;;  %v2470_v44 = vsel %vm1184_vm8, %v2468_v60, %v3700_v56 }
0x18b2   :  { %v3821_v36 = vpop.eup %3820 }
0x18b3   :  { %v2348_v38 = vsel %vm434_vm5, %v3821_v36, 0.0 }
0x18b4   :  { %v3823_v39 = vpop.eup %3822  ;;  %2349 = vadd.xlane.f32.xlu0 %v2348_v38 }
0x18b5   :  { %v2345_v42 = vsel %vm430_vm6, %v3823_v39, 0.0 }
0x18b8   :  { %2346 = vadd.xlane.f32.xlu0 %v2345_v42 }
0x18ce   :  { %2355 = vrot.lane.b32.xlu0 %v4375_v33, %s4725_s3  ;;  %v3736_v33 = vld [vmem:[%s4670_s8 + $0x18] sm:$0xff]  }
0x193d   :  { %v2350_v43 = vpop.xlane.xlu0 %2349 }
0x193e   :  { %3824 = vrcp.f32 %v2350_v43  ;;  %v3268_v43 = vld [vmem:[%s4673_s11 + $0x1] ss:$0 sm:$0xff] }
0x1941   :  { %v2347_v45 = vpop.xlane.xlu0 %2346 }
0x1942   :  { %3826 = vrcp.f32 %v2347_v45 }
0x1945   :  { %v2356_v46 = vpop.permute.xlu0 %2355 }
0x1946   :  { %3586 = vmatprep.subr.mxu1 %v2356_v46 }
0x1947   :  { %3587 = vmatpush3.msra.mxu1 %v2356_v46 }
0x1948   :  { %3591 = vmatprep.subr.bf16.mxu1 %v3893_v40 }
0x194b   :  { %v3825_v47 = vpop.eup %3824 }
0x194c   :  { %v2354_v5 = vmul.f32 %v3825_v47, %v3821_v36  ;;  %v3267_v36 = vld [vmem:[%s4672_s10 + $0x1] ss:$0 sm:$0xff] }
0x194f   :  { %v3827_v48 = vpop.eup %3826 }
0x1950   :  { %v2353_v50 = vmul.f32 %v3827_v48, %v3823_v39 }
0x1952   :  { %3588 = vmatprep.mubr.msk.f32.mxu1 %vm430_vm6, %v2353_v50  ;;  %v3740_v50 = vld [vmem:[%s4676_s14 + $0x78] sm:$0xff]  }
0x1953   :  { %3589 = vmatmul.mubr.msk.f32.vlgmr.msra.gmra.mxu1 %vm430_vm6, %v2354_v5  ;;  %v3741_v5 = vld [vmem:[%s4676_s14 + $0x70] sm:$0xff]  }
0x1954   :  { %3595 = vmatprep.mubr.msk.bf16.mxu1 %vm3894_vm3, %v3893_v40  ;;  %3592 = vmatpush3.bf16.msra.mxu1 %v3736_v33  ;;  %v3742_v33 = vld [vmem:[%s4676_s14 + $0x68] sm:$0xff]  }
0x1955   :  { %3593 = vmatprep.subr.bf16.mxu1 %v3893_v40 }
0x1958   :  { %3594 = vmatpush3.bf16.msra.mxu1 %v3737_v8  ;;  %v3743_v8 = vld [vmem:[%s4676_s14 + $0x60] sm:$0xff]  }
0x1959   :  { %3607 = vmatprep.subr.bf16.mxu1 %v3893_v40 }
0x1a13   :  { %v3590_v51 = vpop.f32.mrf.mxu1 }
0x1a15   :  { %v2434_v52 = vpop.f32.mrf.mxu1 }
0x1a16   :  { %v3701_v21 = vpack.i.bf16 %v3590_v51, %v2434_v52  ;;  %v3744_v51 = vld [vmem:[%s4676_s14 + $0x58] sm:$0xff]   ;;  %v3745_v52 = vld [vmem:[%s4676_s14 + $0x50] sm:$0xff]  }
0x1a18   :  { %3702 = vrot.lane.b32.xlu1 %v3701_v21, %s4728_s7  ;;  %v3746_v21 = vld [vmem:[%s4676_s14 + $0x48] sm:$0xff]  }
0x1a8a   :  { %v3703_v59 = vpop.permute.xlu1 %3702 }
0x1a8b   :  { %v3705_v1 = vunpack.i.h.bf16 %v3703_v59  ;;  %v3704_v2 = vunpack.i.l.bf16 %v3703_v59 }
0x1a8d   :  { %v2471_v4 = vsel %vm1187_vm9, %v2469_v3, %v3704_v2  ;;  %v2472_v61 = vsel %vm1187_vm9, %v2470_v44, %v3705_v1 }
0x1a8e   :  { %v2478_v6 = vpack.c.bf16 %v2472_v61, %v2471_v4 }
0x1a90   :  { %3596 = vmatmul.mubr.msk.bf16.vlgmr.msra.gmra.mxu1 %vm223_vm1, %v2478_v6 }
0x1a91   :  { %3623 = vmatprep.mubr.msk.bf16.mxu1 %vm3894_vm3, %v3893_v40  ;;  %3608 = vmatpush3.bf16.msra.mxu1 %v3740_v50 }
0x1a92   :  { %3609 = vmatprep.subr.bf16.mxu1 %v3893_v40 }
0x1a95   :  { %3610 = vmatpush3.bf16.msra.mxu1 %v3741_v5 }
0x1a96   :  { %3611 = vmatprep.subr.bf16.mxu1 %v3893_v40 }
0x1a99   :  { %3612 = vmatpush3.bf16.msra.mxu1 %v3742_v33 }
0x1a9a   :  { %3613 = vmatprep.subr.bf16.mxu1 %v3893_v40 }
0x1a9d   :  { %3614 = vmatpush3.bf16.msra.mxu1 %v3743_v8 }
0x1a9e   :  { %3615 = vmatprep.subr.bf16.mxu1 %v3893_v40 }
0x1aa1   :  { %3616 = vmatpush3.bf16.msra.mxu1 %v3744_v51  ;;  %v2931_v51 = vld [vmem:[%s4680_s18 + $0x18] sm:$0xff] }
0x1aa2   :  { %3617 = vmatprep.subr.bf16.mxu1 %v3893_v40 }
0x1aa5   :  { %3618 = vmatpush3.bf16.msra.mxu1 %v3745_v52  ;;  %v2935_v52 = vmul.f32 %v2931_v51, %v2931_v51 }
0x1aa6   :  { %3619 = vmatprep.subr.bf16.mxu1 %v3893_v40 }
0x1aa9   :  { %3620 = vmatpush3.bf16.msra.mxu1 %v3746_v21  ;;  %v2930_v21 = vld [vmem:[%s4680_s18 + $0x10] sm:$0xff] }
0x1aaa   :  { %3621 = vmatprep.subr.bf16.mxu1 %v3893_v40 }
0x1aad   :  { %3622 = vmatpush3.bf16.msra.mxu1 %v3747_v53  ;;  %v2934_v53 = vmul.f32 %v2930_v21, %v2930_v21 }
0x1b50   :  { %v2528_v13 = vpop.f32.mrf.mxu1 }
0x1b51   :  { %v2535_v49 = vadd.f32 %v2528_v13, %v4345_v57 }
0x1b52   :  { %v3597_v7 = vpop.f32.mrf.mxu1 }
0x1b53   :  { %v4535_v9 = vadd.f32 %v3264_v15, %v2535_v49 }
0x1b54   :  { %v2531_v10 = vpop.f32.mrf.mxu1 }
0x1b55   :  { %v2536_v11 = vadd.f32 %v2531_v10, %v4350_v63  ;;  %v2551_v12 = vsel %vm223_vm1, %v4535_v9, 0.0 }
0x1b56   :  { %2552 = vadd.xlane.f32.xlu0 %v2551_v12  ;;  %v3598_v14 = vpop.f32.mrf.mxu1 }
0x1b57   :  { %v4540_v16 = vadd.f32 %v3264_v15, %v2536_v11 }
0x1b59   :  { %v2554_v0 = vsel %vm227_vm2, %v4540_v16, 0.0 }
0x1b5a   :  { %2555 = vadd.xlane.f32.xlu1 %v2554_v0 }
0x1bdf   :  { %v2553_v17 = vpop.xlane.xlu0 %2552 }
0x1be0   :  { %v2557_v18 = vmul.f32 0.03125, %v2553_v17 }
0x1be2   :  { %v2559_v57 = vsub.f32 %v4535_v9, %v2557_v18 }
0x1be3   :  { %v2556_v19 = vpop.xlane.xlu1 %2555 }
0x1be4   :  { %v2558_v22 = vmul.f32 0.03125, %v2556_v19  ;;  %v2561_v23 = vmul.f32 %v2559_v57, %v2559_v57 }
0x1be6   :  { %v2560_v63 = vsub.f32 %v4540_v16, %v2558_v22  ;;  %v2563_v24 = vsel %vm223_vm1, %v2561_v23, 0.0 }
0x1be7   :  { %2564 = vadd.xlane.f32.xlu0 %v2563_v24 }
0x1be8   :  { %v2562_v27 = vmul.f32 %v2560_v63, %v2560_v63 }
0x1bea   :  { %v2566_v28 = vsel %vm227_vm2, %v2562_v27, 0.0 }
0x1beb   :  { %2567 = vadd.xlane.f32.xlu0 %v2566_v28 }
0x1c70   :  { %v2565_v31 = vpop.xlane.xlu0 %2564 }
0x1c71   :  { %v2569_v32 = vmul.f32 0.03125, %v2565_v31 }
0x1c73   :  { %v2571_v34 = vadd.f32 1e-12, %v2569_v32 }
0x1c74   :  { %v2568_v20 = vpop.xlane.xlu0 %2567 }
0x1c75   :  { %3828 = vrsqrt.f32 %v2571_v34  ;;  %v2570_v35 = vmul.f32 0.03125, %v2568_v20 }
0x1c77   :  { %v2572_v37 = vadd.f32 1e-12, %v2570_v35 }
0x1c79   :  { %3830 = vrsqrt.f32 %v2572_v37 }
0x1c82   :  { %v3829_v25 = vpop.eup %3828 }
0x1c83   :  { %v2575_v41 = vmul.f32 %v3829_v25, %v2559_v57  ;;  %v2800_v57 = vlaneseq }
0x1c85   :  { %v2583_v42 = vmul.f32 %v3267_v36, %v2575_v41  ;;  %v4599_v19 = vshrl.u32 %v2800_v57, 7 }
0x1c86   :  { %v3831_v38 = vpop.eup %3830 }
0x1c87   :  { %v2576_v39 = vmul.f32 %v3831_v38, %v2560_v63  ;;  %v2591_v46 = vadd.f32 %v3268_v43, %v2583_v42  ;;  %v4601_v63 = vand.u32 127, %v2800_v57  ;;  %v2804_v24 = vmul.u32 5, %v4599_v19 }
0x1c89   :  { %v2584_v45 = vmul.f32 %v3267_v36, %v2576_v39  ;;  %vm2805_vm10 = vcmp.eq.s32.totalorder %v4601_v63, %v2804_v24 }
0x1c8a   :  { %v3304_v20 = vsel %vm2805_vm10, 1.0, %v3893_v40 }
0x1c8b   :  { %v2592_v47 = vadd.f32 %v3268_v43, %v2584_v45 }
0x1c8d   :  { %v2598_v48 = vpack.c.bf16 %v2592_v47, %v2591_v46  ;;  %v3307_v46 = vld [vmem:[%s4678_s16] ss:$0 sm:$0xff] }
0x1c8f   :  { %3604 = vmatmul.mubr.msk.bf16.vlgmr.msra.gmra.mxu0 %vm223_vm1, %v2598_v48  ;;  %v3308_v48 = vld [vmem:[%s4679_s17] ss:$0 sm:$0xff] }
0x1c90   :  { %3631 = vmatprep.mubr.msk.f32.mxu0 %vm3894_vm3, %v3893_v40 }
0x1d4f   :  { %v2656_v55 = vpop.f32.mrf.mxu0 }
0x1d50   :  { %v2657_v26 = vadd.f32 %v3274_v54, %v2656_v55 }
0x1d51   :  { %v3605_v56 = vpop.f32.mrf.mxu0 }
0x1d52   :  { %v2663_v58 = vmul.f32 %v2657_v26, %v2657_v26 }
0x1d53   :  { %v2659_v59 = vpop.f32.mrf.mxu0 }
0x1d54   :  { %v2665_v60 = vmul.f32 %v2663_v58, %v2657_v26  ;;  %v2660_v62 = vadd.f32 %v3274_v54, %v2659_v59  ;;  %v2929_v54 = vld [vmem:[%s4680_s18 + $0x8] sm:$0xff]  ;;  %v3909_v58 = vmov 1.0   ;;  %v3107_v59 = vld [vmem:[%s4681_s19] sm:$0x3]  ;;  %s3910_s19 = smov [#allocation2]  }
0x1d55   :  { %v3606_v1 = vpop.f32.mrf.mxu0  ;;  %v2933_v55 = vmul.f32 %v2929_v54, %v2929_v54  ;;  %s3127_s23 = sshll.u32 %s3910_s19, 4  ;;  %s3128_s23 = int_to_ptr.vmem [resolvable:$true] %s3127_s23 }
0x1d56   :  { %v2667_v2 = vmul.f32 0.044715, %v2665_v60  ;;  %v2664_v3 = vmul.f32 %v2660_v62, %v2660_v62  ;;  %s3848_s6 = scalar_lea.vmem %s3128_s23, 32  ;;  %p3853_p1 = scmp.lt.s32.totalorder %s3128_s23, %s3128_s23 }
0x1d57   :  { %p3849_p0 = scmp.ne.s32.totalorder %s3128_s23, %s3848_s6  ;;  %p3854_p2 = scmp.lt.s32.totalorder %s3848_s6, %s3848_s6 }
0x1d58   :  { %v2669_v44 = vadd.f32 %v2667_v2, %v2657_v26  ;;  %v2666_v4 = vmul.f32 %v2664_v3, %v2660_v62 }
0x1d59   :  { %p3855_p3 = por %p3854_p2, %p3853_p1 }
0x1d5a   :  { %v2671_v61 = vmul.f32 0.7978846, %v2669_v44  ;;  %v2668_v6 = vmul.f32 0.044715, %v2666_v4 }
0x1d5b   :  { %p3856_p4 = pnand %p3855_p3, %p3849_p0 }
0x1d5c   :  { %3832 = vtanh.f32 %v2671_v61  ;;  %v2670_v13 = vadd.f32 %v2668_v6, %v2660_v62 }
0x1d5e   :  { %v2672_v15 = vmul.f32 0.7978846, %v2670_v13 }
0x1d60   :  { %3834 = vtanh.f32 %v2672_v15 }
0x1d69   :  { %v3833_v49 = vpop.eup %3832 }
0x1d6a   :  { %v2675_v7 = vadd.f32 1.0, %v3833_v49 }
0x1d6c   :  { %v2677_v11 = vmul.f32 0.5, %v2675_v7 }
0x1d6d   :  { %v3835_v10 = vpop.eup %3834 }
0x1d6e   :  { %v2676_v12 = vadd.f32 1.0, %v3835_v10  ;;  %v2679_v0 = vmul.f32 %v2677_v11, %v2657_v26  ;;  %v2928_v26 = vld [vmem:[%s4680_s18] sm:$0xff] }
0x1d6f   :  { %v2932_v56 = vmul.f32 %v2928_v26, %v2928_v26 }
0x1d70   :  { %v2678_v14 = vmul.f32 0.5, %v2676_v12 }
0x1d72   :  { %v2680_v17 = vmul.f32 %v2678_v14, %v2660_v62 }
0x1d74   :  { %v2698_v18 = vpack.c.bf16 %v2680_v17, %v2679_v0 }
0x1d76   :  { %3624 = vmatmul.mubr.bf16.vlgmr.msra.gmra.mxu1 %v2698_v18 }
0x1e36   :  { %v2781_v22 = vpop.f32.mrf.mxu1 }
0x1e37   :  { %v2788_v28 = vadd.f32 %v2781_v22, %v4535_v9 }
0x1e38   :  { %v3625_v23 = vpop.f32.mrf.mxu1 }
0x1e39   :  { %v2798_v34 = vadd.f32 %v3303_v30, %v2788_v28 }
0x1e3a   :  { %v2784_v27 = vpop.f32.mrf.mxu1 }
0x1e3b   :  { %v2789_v29 = vadd.f32 %v2784_v27, %v4540_v16 }
0x1e3c   :  { %v3626_v31 = vpop.f32.mrf.mxu1 }
0x1e3d   :  { %v2799_v32 = vadd.f32 %v3303_v30, %v2789_v29 }
0x1e3f   :  { %3628 = vmatpush3.msk.msra.mxu0 %vm465_vm7, %v2799_v32 }
0x1e40   :  { %3629 = vmatprep.subr.mxu0 %v3893_v40 }
0x1e41   :  { %3630 = vmatpush3.msra.mxu0 %v2798_v34 }
0x1e42   :  { %3632 = vmatmul.mubr.msk.f32.vlgmr.msra.gmra.mxu0 %vm430_vm6, %v3304_v20  ;;  %3634 = vmatprep.subr.mxu0 %v3893_v40 }
0x1e43   :  { %3642 = vmatprep.mubr.msk.f32.mxu0 %vm3894_vm3, %v3893_v40  ;;  %3635 = vmatpush3.msra.mxu0 %v2935_v52 }
0x1e44   :  { %3636 = vmatprep.subr.mxu0 %v3893_v40 }
0x1e45   :  { %3637 = vmatpush3.msra.mxu0 %v2934_v53 }
0x1e46   :  { %3638 = vmatprep.subr.mxu0 %v3893_v40 }
0x1e47   :  { %3639 = vmatpush3.msra.mxu0 %v2933_v55 }
0x1e48   :  { %3640 = vmatprep.subr.mxu0 %v3893_v40 }
0x1e49   :  { %3641 = vmatpush3.msra.mxu0 %v2932_v56 }
0x1e4a   :  { %3643 = vmatmul.mubr.msk.f32.vlgmr.msra.gmra.mxu0 %vm223_vm1, %v3909_v58  ;;  %3645 = vmatprep.subr.mxu0 %v3893_v40 }
0x1e4b   :  { %3646 = vmatpush3.msra.mxu0 %v2931_v51  ;;  %3653 = vmatprep.mubr.msk.f32.mxu0 %vm3894_vm3, %v3893_v40 }
0x1e4c   :  { %3647 = vmatprep.subr.mxu0 %v3893_v40 }
0x1e4d   :  { %3648 = vmatpush3.msra.mxu0 %v2930_v21 }
0x1e4e   :  { %3649 = vmatprep.subr.mxu0 %v3893_v40 }
0x1e4f   :  { %3650 = vmatpush3.msra.mxu0 %v2929_v54 }
0x1e50   :  { %3651 = vmatprep.subr.mxu0 %v3893_v40 }
0x1e51   :  { %3652 = vmatpush3.msra.mxu0 %v2928_v26 }
0x1f02   :  { %v2880_v9 = vpop.f32.mrf.mxu0 }
0x1f03   :  { %v2886_v16 = vsel %vm227_vm2, %v2880_v9, 0.0 }
0x1f04   :  { %2887 = vadd.xlane.f32.xlu0 %v2886_v16  ;;  %v3633_v35 = vpop.f32.mrf.mxu0 }
0x1f0a   :  { %v3005_v13 = vpop.f32.mrf.mxu0 }
0x1f0c   :  { %v3644_v15 = vpop.f32.mrf.mxu0 }
0x1f8d   :  { %v2888_v37 = vpop.xlane.xlu0 %2887 }
0x1f8e   :  { %v2889_v25 = vmul.f32 0.03125, %v2888_v37 }
0x1f90   :  { %v2890_v41 = vsub.f32 %v2880_v9, %v2889_v25 }
0x1f92   :  { %v2891_v36 = vmul.f32 %v2890_v41, %v2890_v41 }
0x1f94   :  { %v2892_v38 = vsel %vm227_vm2, %v2891_v36, 0.0 }
0x1f95   :  { %2893 = vadd.xlane.f32.xlu1 %v2892_v38 }
0x1fa6   :  { %3109 = vperm.xlu1 %3706, %v3107_v59  }
0x201e   :  { %v2894_v39 = vpop.xlane.xlu1 %2893 }
0x201f   :  { %v2895_v42 = vmul.f32 0.03125, %v2894_v39 }
0x2021   :  { %v2896_v43 = vadd.f32 1e-12, %v2895_v42 }
0x2023   :  { %3836 = vrsqrt.f32 %v2896_v43 }
0x2030   :  { %v3837_v45 = vpop.eup %3836 }
0x2031   :  { %v2898_v47 = vmul.f32 %v3837_v45, %v2890_v41 }
0x2033   :  { %v2905_v50 = vmul.f32 %v3307_v46, %v2898_v47 }
0x2035   :  { %v2912_v5 = vadd.f32 %v3308_v48, %v2905_v50 }
0x2037   :  { %v2913_v33 = vmul.f32 %v2912_v5, %v2912_v5 }
0x2039   :  { %v2914_v8 = vsel %vm227_vm2, %v2913_v33, 0.0 }
0x203a   :  { %2915 = vadd.xlane.f32.xlu0 %v2914_v8 }
0x20c3   :  { %v2916_v60 = vpop.xlane.xlu0 %2915 }
0x20c4   :  { %3838 = vrsqrt.f32 %v2916_v60  ;;  %vm2919_vm11 = vcmp.eq.f32.partialorder %v2916_v60, inf  ;;  %v2922_v2 = vand.u32 2147483648, %v2916_v60  ;;  %vm2921_vm12 = vcmp.eq.f32.partialorder %v2916_v60, 0.0 }
0x20d1   :  { %v3839_v62 = vpop.eup %3838 }
0x20d2   :  { %v2918_v1 = vmul.f32 %v3839_v62, %v2916_v60 }
0x20d4   :  { %v2920_v3 = vsel %vm2919_vm11, %v2916_v60, %v2918_v1 }
0x20d5   :  { %v2923_v44 = vsel %vm2921_vm12, %v2922_v2, %v2920_v3 }
0x20d6   :  { %v2924_v4 = vmax.f32 %v2923_v44, 1e-12 }
0x20d8   :  { %3840 = vrcp.f32 %v2924_v4 }
0x20e5   :  { %v3841_v61 = vpop.eup %3840 }
0x20e6   :  { %v2926_v6 = vmul.f32 %v3841_v61, %v2912_v5 }
0x20e8   :  { %3654 = vmatmul.mubr.msk.f32.vlgmr.msra.gmra.mxu0 %vm223_vm1, %v2926_v6  ;;  %2927 = vst.msk [vmem:[#allocation2] sm:$0x3] %vm227_vm2, %v2926_v6 }
0x20e9   :  { %3859 = shalt.err (!%p3856_p4)
}
0x20ea   :  { %3130 = dma.vmem_to_hbm [thread:$0]  %s3128_s23, 32, %s4682_s20, [#allocation3]   ;;  %v3009_v49 = vmax.f32 %v3005_v13, 1e-24  ;;  %v3086_v7 = vsub.s32 0, %v4599_v19  ;;  %v3110_v23 = vpop.permute.xlu1 %3109  ;;  %vm3119_vm1 = vcmask 123904  }
0x20eb   :  { %vm3111_vm13 = vcmp.eq.s32.totalorder %v4601_v63, %v3110_v23  ;;  %s3911_s20 = smov [#allocation4]  }
0x20ec   :  { %3842 = vrsqrt.f32 %v3009_v49  ;;  %v3313_v29 = vsel %vm3111_vm13, 1.0, %v3893_v40  ;;  %s3137_s26 = sshll.u32 %s3911_s20, 4  ;;  %s3138_s26 = int_to_ptr.vmem [resolvable:$true] %s3137_s26 }
0x20ed   :  { %v3115_v34 = vsub.f32 1.0, %v3313_v29  ;;  %s3868_s7 = scalar_lea.vmem %s3138_s26, 32  ;;  %p3873_p6 = scmp.lt.s32.totalorder %s3138_s26, %s3138_s26 }
0x20ee   :  { %p3869_p5 = scmp.ne.s32.totalorder %s3138_s26, %s3868_s7  ;;  %p3874_p7 = scmp.lt.s32.totalorder %s3868_s7, %s3868_s7 }
0x20f0   :  { %p3875_p8 = por %p3874_p7, %p3873_p6 }
0x20f2   :  { %p3876_p9 = pnand %p3875_p8, %p3869_p5 }
0x20f9   :  { %v3843_v10 = vpop.eup %3842 }
0x20fa   :  { %v3087_v11 = vrot.slane %v3843_v10, %v3086_v7 }
0x21a8   :  { %v3080_v12 = vpop.f32.mrf.mxu0 }
0x21a9   :  { %v3088_v14 = vmul.f32 %v3087_v11, %v3080_v12 }
0x21aa   :  { %v3655_v0 = vpop.f32.mrf.mxu0 }
0x21ab   :  { %v3311_v17 = vclamps-f32 %v3088_v14, 1.0 }
0x21ad   :  { %v3091_v18 = vmul.f32 %v3311_v17, %v3311_v17  ;;  %v3101_v31 = vmul.f32 0.87758255, %v3311_v17  ;;  %v3312_v9 = vadd.f32 -0.23971277, %v3311_v17  ;;  %vm3104_vm0 = vcmp.gt.f32.partialorder %v3311_v17, -0.87758255 }
0x21ae   :  { %v3116_v37 = vmul.f32 %v3311_v17, %v3115_v34 }
0x21af   :  { %v3092_v57 = vsub.f32 1.0, %v3091_v18 }
0x21b1   :  { %v3093_v22 = vmax.f32 %v3092_v57, 0.0 }
0x21b3   :  { %3844 = vrsqrt.f32 %v3093_v22  ;;  %vm3096_vm14 = vcmp.eq.f32.partialorder %v3093_v22, inf  ;;  %v3099_v28 = vand.u32 2147483648, %v3093_v22  ;;  %vm3098_vm15 = vcmp.eq.f32.partialorder %v3093_v22, 0.0 }
0x21c0   :  { %v3845_v24 = vpop.eup %3844 }
0x21c1   :  { %v3095_v27 = vmul.f32 %v3845_v24, %v3093_v22 }
0x21c3   :  { %v3097_v19 = vsel %vm3096_vm14, %v3093_v22, %v3095_v27 }
0x21c4   :  { %v3100_v30 = vsel %vm3098_vm15, %v3099_v28, %v3097_v19 }
0x21c5   :  { %v3102_v32 = vmul.f32 0.47942555, %v3100_v30 }
0x21c7   :  { %v3103_v20 = vsub.f32 %v3101_v31, %v3102_v32 }
0x21c9   :  { %v3106_v16 = vsel %vm3104_vm0, %v3103_v20, %v3312_v9 }
0x21ca   :  { %v3114_v35 = vmul.f32 %v3313_v29, %v3106_v16 }
0x21cc   :  { %v3117_v63 = vadd.f32 %v3116_v37, %v3114_v35 }
0x21ce   :  { %v3118_v25 = vmul.f32 32.0, %v3117_v63 }
0x21d0   :  { %3120 = vst.msk [vmem:[#allocation4] sm:$0x3] %vm3119_vm1, %v3118_v25 }
0x21d1   :  { %3879 = shalt.err (!%p3876_p9)
}
0x21d2   :  { %3140 = dma.vmem_to_hbm [thread:$0]  %s3138_s26, 32, %s4683_s21, [#allocation5]  }
0x21d3   :  { %3888 = dma.done.wait [#allocation3], 32  }
0x21d4   :  { %3889 = vsyncadd [#allocation3], 4294967264 }
0x21d5   :  { %3890 = dma.done.wait [#allocation5], 32  }
0x21d6   :  { %3891 = vsyncadd [#allocation5], 4294967264 }
0x21d7   :  { %3147 = vsyncpa [#allocation3], 1 }
0x21d8   :  { %3148 = vsyncpa [#allocation5], 1 }

</bundles_post_ra>
